<compile_context>
chip_gen: v7x
topology: tpu7x:2x2x1
jax: 0.10.0
libtpu: 0.0.40
codegen_flags: <defaults>
</compile_context>

<pallas_src>
import functools

import jax
import jax.numpy as jnp
from jax.experimental import pallas as pl
from jax.experimental.pallas import tpu as pltpu

_MXU_DTYPE = jnp.bfloat16   # MXU operand dtype (accumulation stays f32)
_LN_EPS = 1e-5              # torch.nn.LayerNorm default
_VMEM_LIMIT = 32 * 1024 * 1024


def _pick_tile(n, tile):
    """Largest tile <= `tile` that divides n and is a multiple of 8 (else full n)."""
    t = min(tile, n)
    for cand in range(t - t % 8, 0, -8):
        if n % cand == 0:
            return cand
    return n


# ----------------------------- Pallas kernels -----------------------------

def _kv_proj_kernel(x_ref, w_ref, o_ref):
    # k_self / k_other / v projections; weights stacked on a leading dim (bf16).
    x = x_ref[...].astype(_MXU_DTYPE)                       # (t, D)
    for c in range(3):
        o_ref[c] = jnp.dot(x, w_ref[c],
                           preferred_element_type=jnp.float32).astype(o_ref.dtype)


def kv_projection(x, w_kv, *, tile_rows=512):
    """x: (N, D) f32, w_kv: (3, D, D) bf16 -> (3, N, D) bf16 (component-major)."""
    n, d = x.shape
    t = _pick_tile(n, tile_rows)
    return pl.pallas_call(
        _kv_proj_kernel,
        grid=(n // t,),
        in_specs=[pl.BlockSpec((t, d), lambda i: (i, 0)),
                  pl.BlockSpec((3, d, d), lambda i: (0, 0, 0))],
        out_specs=pl.BlockSpec((3, t, d), lambda i: (0, i, 0)),
        out_shape=jax.ShapeDtypeStruct((3, n, d), _MXU_DTYPE),
        compiler_params=pltpu.CompilerParams(dimension_semantics=("parallel",)),
    )(x, w_kv)


def _ffn_ln_kernel(x_ref, w1_ref, b1_ref, w2_ref, b2_ref, g_ref, beta_ref, o_ref):
    # linear1 -> relu -> linear2 -> +residual -> LayerNorm (dropout = identity)
    x = x_ref[...]
    h = jnp.dot(x.astype(_MXU_DTYPE), w1_ref[...],
                preferred_element_type=jnp.float32) + b1_ref[...]
    h = jnp.maximum(h, 0.0)
    f = jnp.dot(h.astype(_MXU_DTYPE), w2_ref[...],
                preferred_element_type=jnp.float32) + b2_ref[...]
    r = f + x
    mu = jnp.mean(r, axis=-1, keepdims=True)
    var = jnp.mean((r - mu) ** 2, axis=-1, keepdims=True)
    o_ref[...] = (r - mu) * jax.lax.rsqrt(var + _LN_EPS) * g_ref[...] + beta_ref[...]


def ffn_ln(x, w1, b1, w2, b2, g, beta, *, tile_rows=512):
    n, d = x.shape
    dff = w1.shape[1]
    t = _pick_tile(n, tile_rows)
    return pl.pallas_call(
        _ffn_ln_kernel,
        grid=(n // t,),
        in_specs=[pl.BlockSpec((t, d), lambda i: (i, 0)),
                  pl.BlockSpec((d, dff), lambda i: (0, 0)),
                  pl.BlockSpec((1, dff), lambda i: (0, 0)),
                  pl.BlockSpec((dff, d), lambda i: (0, 0)),
                  pl.BlockSpec((1, d), lambda i: (0, 0)),
                  pl.BlockSpec((1, d), lambda i: (0, 0)),
                  pl.BlockSpec((1, d), lambda i: (0, 0))],
        out_specs=pl.BlockSpec((t, d), lambda i: (i, 0)),
        out_shape=jax.ShapeDtypeStruct((n, d), jnp.float32),
        compiler_params=pltpu.CompilerParams(
            dimension_semantics=("parallel",), vmem_limit_bytes=_VMEM_LIMIT),
    )(x, w1, b1, w2, b2, g, beta)


def _attn_kernel(x_ref, kv_ref, som_ref, mask_ref, wq_ref, wout_ref, bout_ref,
                 g_ref, beta_ref, y_ref, w_ref, *, n_head, scale):
    """One (batch, query-tile) step: fused q_self/q_other projection, agent-aware
    per-head scores + softmax, PV, single K=D out-projection over concatenated
    heads, residual add and LayerNorm.  Also writes head-averaged weights."""
    xq = x_ref[0]                                  # (tT, D) f32 (query src + residual)
    xq_b = xq.astype(_MXU_DTYPE)

    # fused query projections; weights leading-dim indexed, K = D full MXU depth
    q_s = jnp.dot(xq_b, wq_ref[0],
                  preferred_element_type=jnp.float32).astype(_MXU_DTYPE)
    q_o = jnp.dot(xq_b, wq_ref[1],
                  preferred_element_type=jnp.float32).astype(_MXU_DTYPE)
    k_s = kv_ref[0, 0]                             # (S, D) bf16
    k_o = kv_ref[1, 0]
    v = kv_ref[2, 0]

    som = som_ref[0] != 0                          # bool (tT, S), computed once
    msk = mask_ref[0].astype(jnp.float32)          # additive mask, f32 once

    t_rows, d_model = xq.shape
    s_len = k_s.shape[0]
    hd = d_model // n_head
    dn = (((1,), (1,)), ((), ()))                  # contract feature dims (q·kᵀ)

    w_sum = jnp.zeros((t_rows, s_len), jnp.float32)
    pv_heads = []
    # TODO(synk): switch to lax.fori_loop(unroll=True) if n_head grows large.
    for h in range(n_head):
        sl = slice(h * hd, (h + 1) * hd)
        a_self = jax.lax.dot_general(q_s[:, sl], k_s[:, sl], dn,
                                     preferred_element_type=jnp.float32)
        a_other = jax.lax.dot_general(q_o[:, sl], k_o[:, sl], dn,
                                      preferred_element_type=jnp.float32)
        s = jnp.where(som, a_self, a_other) * scale + msk
        s = s - jnp.max(s, axis=-1, keepdims=True)
        p = jnp.exp(s)
        p = p / jnp.sum(p, axis=-1, keepdims=True)   # exact: rows sum to 1
        w_sum = w_sum + p
        pv_heads.append(jnp.dot(p.astype(_MXU_DTYPE), v[:, sl],
                                preferred_element_type=jnp.float32))

    # concat heads -> ONE full-depth (K = D) output projection on the MXU
    pv = jnp.concatenate(pv_heads, axis=-1).astype(_MXU_DTYPE)   # (tT, D)
    r = jnp.dot(pv, wout_ref[...], preferred_element_type=jnp.float32) \
        + bout_ref[...] + xq
    mu = jnp.mean(r, axis=-1, keepdims=True)
    var = jnp.mean((r - mu) ** 2, axis=-1, keepdims=True)
    y_ref[0] = (r - mu) * jax.lax.rsqrt(var + _LN_EPS) * g_ref[...] + beta_ref[...]
    w_ref[0] = w_sum * (1.0 / n_head)


def _mask_imap(m, B):
    # Unbroadcast masks (leading dim 1) are batch-pinned; batched masks follow b.
    if m.shape[0] == B:
        return lambda b, t: (b, t, 0)
    return lambda b, t: (0, t, 0)


def agent_aware_attention_block(x_q, kv, som, mask, w_q, w_out, b_out, g, beta,
                                *, n_head, tile_t=128):
    """x_q: (B,T,D) f32 (query source = residual), kv: (3,B,S,D) bf16.
    Returns (LayerNorm(x_q + attn_out) (B,T,D) f32, avg weights (B,T,S) f32)."""
    B, T, D = x_q.shape
    S = kv.shape[2]
    tT = _pick_tile(T, tile_t)
    scale = float(D // n_head) ** -0.5
    kern = functools.partial(_attn_kernel, n_head=n_head, scale=scale)
    y, w = pl.pallas_call(
        kern,
        grid=(B, T // tT),
        in_specs=[pl.BlockSpec((1, tT, D), lambda b, t: (b, t, 0)),
                  pl.BlockSpec((3, 1, S, D), lambda b, t: (0, b, 0, 0)),
                  pl.BlockSpec((1, tT, S), _mask_imap(som, B)),
                  pl.BlockSpec((1, tT, S), _mask_imap(mask, B)),
                  pl.BlockSpec((2, D, D), lambda b, t: (0, 0, 0)),
                  pl.BlockSpec((D, D), lambda b, t: (0, 0)),
                  pl.BlockSpec((1, D), lambda b, t: (0, 0)),
                  pl.BlockSpec((1, D), lambda b, t: (0, 0)),
                  pl.BlockSpec((1, D), lambda b, t: (0, 0))],
        out_specs=[pl.BlockSpec((1, tT, D), lambda b, t: (b, t, 0)),
                   pl.BlockSpec((1, tT, S), lambda b, t: (b, t, 0))],
        out_shape=(jax.ShapeDtypeStruct((B, T, D), jnp.float32),
                   jax.ShapeDtypeStruct((B, T, S), jnp.float32)),
        compiler_params=pltpu.CompilerParams(
            dimension_semantics=("parallel", "parallel"),
            vmem_limit_bytes=_VMEM_LIMIT),
    )(x_q, kv, som, mask, w_q, w_out, b_out, g, beta)
    return y, w


# ----------------------------- JAX glue -----------------------------

def _prep_mask(m, T, S):
    """Normalize masks to (1,T,S) or (B,T,S) bf16 (halves mask HBM traffic)."""
    if m is None:
        return jnp.zeros((1, T, S), _MXU_DTYPE)
    m = jnp.asarray(m, _MXU_DTYPE)
    if m.ndim == 2:
        m = m[None]
    return m


def decoder_layer_forward(params, tgt, memory, tgt_tgt_so_mask, tgt_mem_so_mask,
                          tgt_mask=None, memory_mask=None, *, n_head):
    T, B, D = tgt.shape
    S = memory.shape[0]

    # batch-major internally (one cheap transpose in, one out)
    tgt_bm = jnp.transpose(tgt, (1, 0, 2))      # (B, T, D)
    mem_bm = jnp.transpose(memory, (1, 0, 2))   # (B, S, D)

    tt_som = _prep_mask(tgt_tgt_so_mask, T, T)
    tm_som = _prep_mask(tgt_mem_so_mask, T, S)
    t_mask = _prep_mask(tgt_mask, T, T)
    m_mask = _prep_mask(memory_mask, T, S)

    # --- self attention: component-major bf16 KV projection; q-proj, out-proj,
    #     residual add and LayerNorm fused in the attention kernel ---
    pa = params['self_attn']
    kv_self = kv_projection(tgt_bm.reshape(B * T, D), pa['w_kv']).reshape(3, B, T, D)
    x1, self_w = agent_aware_attention_block(
        tgt_bm, kv_self, tt_som, t_mask, pa['w_q'], pa['w_out'], pa['b_out'],
        params['norm1_g'], params['norm1_b'], n_head=n_head)

    # --- cross attention ---
    pc = params['cross_attn']
    kv_cross = kv_projection(mem_bm.reshape(B * S, D), pc['w_kv']).reshape(3, B, S, D)
    x2, cross_w = agent_aware_attention_block(
        x1, kv_cross, tm_som, m_mask, pc['w_q'], pc['w_out'], pc['b_out'],
        params['norm2_g'], params['norm2_b'], n_head=n_head)

    # --- feed-forward + add&LN fused ---
    out_bm = ffn_ln(x2.reshape(B * T, D), params['lin1_w'], params['lin1_b'],
                    params['lin2_w'], params['lin2_b'],
                    params['norm3_g'], params['norm3_b']).reshape(B, T, D)

    out = jnp.transpose(out_bm, (1, 0, 2))      # back to (T, B, D)
    return out, self_w, cross_w


def init_params(key, d_model, dim_ff, scale=0.02):
    # All matmul weights are stored in bf16 (MXU operand dtype); biases / LN in f32.
    def w(k, shape):
        return (scale * jax.random.normal(k, shape, jnp.float32)).astype(_MXU_DTYPE)

    def attn_params(k):
        ks = jax.random.split(k, 6)
        return {
            # stacked, leading-dim-indexed projection weights (bias_self/other = False)
            'w_q': jnp.stack([w(ks[0], (d_model, d_model)),      # q_self
                              w(ks[1], (d_model, d_model))]),    # q_other
            'w_kv': jnp.stack([w(ks[2], (d_model, d_model)),     # k_self
                               w(ks[3], (d_model, d_model)),     # k_other
                               w(ks[4], (d_model, d_model))]),   # v
            # bias_out = True
            'w_out': w(ks[5], (d_model, d_model)),
            'b_out': 0.01 * jnp.ones((1, d_model), jnp.float32),
        }

    ks = jax.random.split(key, 4)
    ones = jnp.ones((1, d_model), jnp.float32)
    zeros = jnp.zeros((1, d_model), jnp.float32)
    return {
        'self_attn': attn_params(ks[0]),
        'cross_attn': attn_params(ks[1]),
        'lin1_w': w(ks[2], (d_model, dim_ff)),
        'lin1_b': jnp.zeros((1, dim_ff), jnp.float32),
        'lin2_w': w(ks[3], (dim_ff, d_model)),
        'lin2_b': zeros,
        'norm1_g': ones, 'norm1_b': zeros,
        'norm2_g': ones, 'norm2_b': zeros,
        'norm3_g': ones, 'norm3_b': zeros,
    }


if __name__ == "__main__":
    D, N_HEAD, DIM_FF = 32, 4, 64
    T, S, B = 8, 8, 2

    key = jax.random.PRNGKey(0)
    kp, kt, km = jax.random.split(key, 3)
    params = init_params(kp, D, DIM_FF)

    tgt = jax.random.normal(kt, (T, B, D), jnp.float32)
    memory = jax.random.normal(km, (S, B, D), jnp.float32)

    # Two interleaved agents -> self/other masks (1 where same agent).
    # Masks passed UNBROADCAST (T, S); kernels broadcast over batch via index_map.
    agent_t = jnp.arange(T) % 2
    agent_s = jnp.arange(S) % 2
    tt_som = (agent_t[:, None] == agent_t[None, :]).astype(jnp.float32)
    tm_som = (agent_t[:, None] == agent_s[None, :]).astype(jnp.float32)

    # Causal additive tgt mask; no memory mask.
    causal = jnp.where(jnp.arange(T)[:, None] >= jnp.arange(T)[None, :],
                       0.0, -1e9).astype(jnp.float32)

    fwd = jax.jit(functools.partial(decoder_layer_forward, n_head=N_HEAD))
    out, self_w, cross_w = fwd(params, tgt, memory, tt_som, tm_som, causal, None)
    jax.block_until_ready((out, self_w, cross_w))

    assert out.shape == (T, B, D)
    assert self_w.shape == (B, T, T)
    assert cross_w.shape == (B, T, S)
    assert bool(jnp.all(jnp.isfinite(out)))
    assert bool(jnp.all(jnp.isfinite(self_w))) and bool(jnp.all(jnp.isfinite(cross_w)))
    # returned attention weights are row-normalized (exact softmax division)
    assert bool(jnp.allclose(jnp.sum(self_w, axis=-1), 1.0, atol=1e-3))
    print("KERNEL_OK")
</pallas_src>

<mosaic_0001>
module attributes {stable_mosaic.version = 11 : i64} {
  func.func @_kv_proj_kernel(%arg0: i32, %arg1: memref<16x32xf32, #tpu.memory_space<vmem>>, %arg2: memref<3x32x32xbf16, #tpu.memory_space<vmem>>, %arg3: memref<3x16x32xbf16, #tpu.memory_space<vmem>>) attributes {dimension_semantics = [#tpu.dimension_semantics<parallel>], iteration_bounds = array<i64: 1>, scalar_prefetch = 0 : i64, scratch_operands = 0 : i64, tpu.core_type = #tpu.core_type<tc>, window_params = [{transform_indices = @transform_0, window_bounds = array<i64: 16, 32>}, {pipeline_mode = #tpu.pipeline_mode<synchronous>, transform_indices = @transform_1, window_bounds = array<i64: 3, 32, 32>}, {transform_indices = @transform_2, window_bounds = array<i64: 3, 16, 32>}]} {
    %c0 = arith.constant 0 : index
    %c0_0 = arith.constant 0 : index
    %0 = vector.load %arg1[%c0, %c0_0] : memref<16x32xf32, #tpu.memory_space<vmem>>, vector<16x32xf32>
    %1 = arith.truncf %0 : vector<16x32xf32> to vector<16x32xbf16>
    %c0_1 = arith.constant 0 : index
    %c0_2 = arith.constant 0 : index
    %c0_3 = arith.constant 0 : index
    %2 = vector.load %arg2[%c0_1, %c0_2, %c0_3] : memref<3x32x32xbf16, #tpu.memory_space<vmem>>, vector<1x32x32xbf16>
    %3 = vector.shape_cast %2 : vector<1x32x32xbf16> to vector<32x32xbf16>
    %cst = arith.constant dense<0.000000e+00> : vector<16x32xf32>
    %4 = tpu.matmul %1, %3, %cst {dimension_numbers = #tpu.dot_dimension_numbers<[1], [0], [0], [1], [0, 0, 1, 1], [], []>} : vector<16x32xbf16>, vector<32x32xbf16>, vector<16x32xf32> -> vector<16x32xf32>
    %5 = arith.truncf %4 : vector<16x32xf32> to vector<16x32xbf16>
    %c0_4 = arith.constant 0 : index
    %c0_5 = arith.constant 0 : index
    %c0_6 = arith.constant 0 : index
    %6 = vector.load %arg3[%c0_4, %c0_5, %c0_6] : memref<3x16x32xbf16, #tpu.memory_space<vmem>>, vector<1x16x32xbf16>
    %7 = vector.shape_cast %6 : vector<1x16x32xbf16> to vector<16x32xbf16>
    %8 = vector.shape_cast %5 : vector<16x32xbf16> to vector<1x16x32xbf16>
    tpu.vector_store %arg3[%c0_4, %c0_5, %c0_6], %8 {strides = array<i32>} : memref<3x16x32xbf16, #tpu.memory_space<vmem>>, vector<1x16x32xbf16>,
    %c1 = arith.constant 1 : index
    %c0_7 = arith.constant 0 : index
    %c0_8 = arith.constant 0 : index
    %9 = vector.load %arg2[%c1, %c0_7, %c0_8] : memref<3x32x32xbf16, #tpu.memory_space<vmem>>, vector<1x32x32xbf16>
    %10 = vector.shape_cast %9 : vector<1x32x32xbf16> to vector<32x32xbf16>
    %cst_9 = arith.constant dense<0.000000e+00> : vector<16x32xf32>
    %11 = tpu.matmul %1, %10, %cst_9 {dimension_numbers = #tpu.dot_dimension_numbers<[1], [0], [0], [1], [0, 0, 1, 1], [], []>} : vector<16x32xbf16>, vector<32x32xbf16>, vector<16x32xf32> -> vector<16x32xf32>
    %12 = arith.truncf %11 : vector<16x32xf32> to vector<16x32xbf16>
    %c1_10 = arith.constant 1 : index
    %c0_11 = arith.constant 0 : index
    %c0_12 = arith.constant 0 : index
    %13 = vector.load %arg3[%c1_10, %c0_11, %c0_12] : memref<3x16x32xbf16, #tpu.memory_space<vmem>>, vector<1x16x32xbf16>
    %14 = vector.shape_cast %13 : vector<1x16x32xbf16> to vector<16x32xbf16>
    %15 = vector.shape_cast %12 : vector<16x32xbf16> to vector<1x16x32xbf16>
    tpu.vector_store %arg3[%c1_10, %c0_11, %c0_12], %15 {strides = array<i32>} : memref<3x16x32xbf16, #tpu.memory_space<vmem>>, vector<1x16x32xbf16>,
    %c2 = arith.constant 2 : index
    %c0_13 = arith.constant 0 : index
    %c0_14 = arith.constant 0 : index
    %16 = vector.load %arg2[%c2, %c0_13, %c0_14] : memref<3x32x32xbf16, #tpu.memory_space<vmem>>, vector<1x32x32xbf16>
    %17 = vector.shape_cast %16 : vector<1x32x32xbf16> to vector<32x32xbf16>
    %cst_15 = arith.constant dense<0.000000e+00> : vector<16x32xf32>
    %18 = tpu.matmul %1, %17, %cst_15 {dimension_numbers = #tpu.dot_dimension_numbers<[1], [0], [0], [1], [0, 0, 1, 1], [], []>} : vector<16x32xbf16>, vector<32x32xbf16>, vector<16x32xf32> -> vector<16x32xf32>
    %19 = arith.truncf %18 : vector<16x32xf32> to vector<16x32xbf16>
    %c2_16 = arith.constant 2 : index
    %c0_17 = arith.constant 0 : index
    %c0_18 = arith.constant 0 : index
    %20 = vector.load %arg3[%c2_16, %c0_17, %c0_18] : memref<3x16x32xbf16, #tpu.memory_space<vmem>>, vector<1x16x32xbf16>
    %21 = vector.shape_cast %20 : vector<1x16x32xbf16> to vector<16x32xbf16>
    %22 = vector.shape_cast %19 : vector<16x32xbf16> to vector<1x16x32xbf16>
    tpu.vector_store %arg3[%c2_16, %c0_17, %c0_18], %22 {strides = array<i32>} : memref<3x16x32xbf16, #tpu.memory_space<vmem>>, vector<1x16x32xbf16>,
    return
  }
  func.func @transform_0(%arg0: i32) -> (i32, i32) {
    %c0_i32 = arith.constant 0 : i32
    %c0_i32_0 = arith.constant 0 : i32
    return %arg0, %c0_i32 : i32, i32
  }
  func.func @transform_1(%arg0: i32) -> (i32, i32, i32) {
    %c0_i32 = arith.constant 0 : i32
    %c0_i32_0 = arith.constant 0 : i32
    %c0_i32_1 = arith.constant 0 : i32
    %c0_i32_2 = arith.constant 0 : i32
    return %c0_i32, %c0_i32_0, %c0_i32_1 : i32, i32, i32
  }
  func.func @transform_2(%arg0: i32) -> (i32, i32, i32) {
    %c0_i32 = arith.constant 0 : i32
    %c0_i32_0 = arith.constant 0 : i32
    %c0_i32_1 = arith.constant 0 : i32
    return %c0_i32, %arg0, %c0_i32_0 : i32, i32, i32
  }
}

module attributes {stable_mosaic.version = 11 : i64} {
  func.func @_attn_kernel(%arg0: i32, %arg1: i32, %arg2: memref<1x8x32xf32, #tpu.memory_space<vmem>>, %arg3: memref<3x1x8x32xbf16, #tpu.memory_space<vmem>>, %arg4: memref<1x8x8xbf16, #tpu.memory_space<vmem>>, %arg5: memref<1x8x8xbf16, #tpu.memory_space<vmem>>, %arg6: memref<2x32x32xbf16, #tpu.memory_space<vmem>>, %arg7: memref<32x32xbf16, #tpu.memory_space<vmem>>, %arg8: memref<1x32xf32, #tpu.memory_space<vmem>>, %arg9: memref<1x32xf32, #tpu.memory_space<vmem>>, %arg10: memref<1x32xf32, #tpu.memory_space<vmem>>, %arg11: memref<1x8x32xf32, #tpu.memory_space<vmem>>, %arg12: memref<1x8x8xf32, #tpu.memory_space<vmem>>) attributes {dimension_semantics = [#tpu.dimension_semantics<parallel>, #tpu.dimension_semantics<parallel>], iteration_bounds = array<i64: 2, 1>, scalar_prefetch = 0 : i64, scratch_operands = 0 : i64, tpu.core_type = #tpu.core_type<tc>, window_params = [{transform_indices = @transform_0, window_bounds = array<i64: 1, 8, 32>}, {transform_indices = @transform_1, window_bounds = array<i64: 3, 1, 8, 32>}, {transform_indices = @transform_2, window_bounds = array<i64: 1, 8, 8>}, {transform_indices = @transform_3, window_bounds = array<i64: 1, 8, 8>}, {pipeline_mode = #tpu.pipeline_mode<synchronous>, transform_indices = @transform_4, window_bounds = array<i64: 2, 32, 32>}, {pipeline_mode = #tpu.pipeline_mode<synchronous>, transform_indices = @transform_5, window_bounds = array<i64: 32, 32>}, {pipeline_mode = #tpu.pipeline_mode<synchronous>, transform_indices = @transform_6, window_bounds = array<i64: 1, 32>}, {pipeline_mode = #tpu.pipeline_mode<synchronous>, transform_indices = @transform_7, window_bounds = array<i64: 1, 32>}, {pipeline_mode = #tpu.pipeline_mode<synchronous>, transform_indices = @transform_8, window_bounds = array<i64: 1, 32>}, {transform_indices = @transform_9, window_bounds = array<i64: 1, 8, 32>}, {transform_indices = @transform_10, window_bounds = array<i64: 1, 8, 8>}]} {
    %c0 = arith.constant 0 : index
    %c0_0 = arith.constant 0 : index
    %c0_1 = arith.constant 0 : index
    %0 = vector.load %arg2[%c0, %c0_0, %c0_1] : memref<1x8x32xf32, #tpu.memory_space<vmem>>, vector<1x8x32xf32>
    %1 = vector.shape_cast %0 : vector<1x8x32xf32> to vector<8x32xf32>
    %2 = arith.truncf %1 : vector<8x32xf32> to vector<8x32xbf16>
    %c0_2 = arith.constant 0 : index
    %c0_3 = arith.constant 0 : index
    %c0_4 = arith.constant 0 : index
    %3 = vector.load %arg6[%c0_2, %c0_3, %c0_4] : memref<2x32x32xbf16, #tpu.memory_space<vmem>>, vector<1x32x32xbf16>
    %4 = vector.shape_cast %3 : vector<1x32x32xbf16> to vector<32x32xbf16>
    %cst = arith.constant dense<0.000000e+00> : vector<8x32xf32>
    %5 = tpu.matmul %2, %4, %cst {dimension_numbers = #tpu.dot_dimension_numbers<[1], [0], [0], [1], [0, 0, 1, 1], [], []>} : vector<8x32xbf16>, vector<32x32xbf16>, vector<8x32xf32> -> vector<8x32xf32>
    %6 = arith.truncf %5 : vector<8x32xf32> to vector<8x32xbf16>
    %c1 = arith.constant 1 : index
    %c0_5 = arith.constant 0 : index
    %c0_6 = arith.constant 0 : index
    %7 = vector.load %arg6[%c1, %c0_5, %c0_6] : memref<2x32x32xbf16, #tpu.memory_space<vmem>>, vector<1x32x32xbf16>
    %8 = vector.shape_cast %7 : vector<1x32x32xbf16> to vector<32x32xbf16>
    %cst_7 = arith.constant dense<0.000000e+00> : vector<8x32xf32>
    %9 = tpu.matmul %2, %8, %cst_7 {dimension_numbers = #tpu.dot_dimension_numbers<[1], [0], [0], [1], [0, 0, 1, 1], [], []>} : vector<8x32xbf16>, vector<32x32xbf16>, vector<8x32xf32> -> vector<8x32xf32>
    %10 = arith.truncf %9 : vector<8x32xf32> to vector<8x32xbf16>
    %c0_8 = arith.constant 0 : index
    %c0_9 = arith.constant 0 : index
    %c0_10 = arith.constant 0 : index
    %c0_11 = arith.constant 0 : index
    %11 = vector.load %arg3[%c0_8, %c0_9, %c0_10, %c0_11] : memref<3x1x8x32xbf16, #tpu.memory_space<vmem>>, vector<1x1x8x32xbf16>
    %12 = vector.shape_cast %11 : vector<1x1x8x32xbf16> to vector<8x32xbf16>
    %c1_12 = arith.constant 1 : index
    %c0_13 = arith.constant 0 : index
    %c0_14 = arith.constant 0 : index
    %c0_15 = arith.constant 0 : index
    %13 = vector.load %arg3[%c1_12, %c0_13, %c0_14, %c0_15] : memref<3x1x8x32xbf16, #tpu.memory_space<vmem>>, vector<1x1x8x32xbf16>
    %14 = vector.shape_cast %13 : vector<1x1x8x32xbf16> to vector<8x32xbf16>
    %c2 = arith.constant 2 : index
    %c0_16 = arith.constant 0 : index
    %c0_17 = arith.constant 0 : index
    %c0_18 = arith.constant 0 : index
    %15 = vector.load %arg3[%c2, %c0_16, %c0_17, %c0_18] : memref<3x1x8x32xbf16, #tpu.memory_space<vmem>>, vector<1x1x8x32xbf16>
    %16 = vector.shape_cast %15 : vector<1x1x8x32xbf16> to vector<8x32xbf16>
    %c0_19 = arith.constant 0 : index
    %c0_20 = arith.constant 0 : index
    %c0_21 = arith.constant 0 : index
    %17 = vector.load %arg4[%c0_19, %c0_20, %c0_21] : memref<1x8x8xbf16, #tpu.memory_space<vmem>>, vector<1x8x8xbf16>
    %18 = vector.shape_cast %17 : vector<1x8x8xbf16> to vector<8x8xbf16>
    %cst_22 = arith.constant 0.000000e+00 : bf16
    %19 = vector.broadcast %cst_22 : bf16 to vector<8x8xbf16>
    %20 = arith.cmpf one, %18, %19 : vector<8x8xbf16>
    %c0_23 = arith.constant 0 : index
    %c0_24 = arith.constant 0 : index
    %c0_25 = arith.constant 0 : index
    %21 = vector.load %arg5[%c0_23, %c0_24, %c0_25] : memref<1x8x8xbf16, #tpu.memory_space<vmem>>, vector<1x8x8xbf16>
    %22 = vector.shape_cast %21 : vector<1x8x8xbf16> to vector<8x8xbf16>
    %23 = arith.extf %22 : vector<8x8xbf16> to vector<8x8xf32>
    %cst_26 = arith.constant 0.000000e+00 : f32
    %24 = vector.broadcast %cst_26 : f32 to vector<8x8xf32>
    %25 = vector.extract_strided_slice %6 {offsets = [0, 0], sizes = [8, 8], strides = [1, 1]} : vector<8x32xbf16> to vector<8x8xbf16>
    %26 = vector.extract_strided_slice %12 {offsets = [0, 0], sizes = [8, 8], strides = [1, 1]} : vector<8x32xbf16> to vector<8x8xbf16>
    %cst_27 = arith.constant dense<0.000000e+00> : vector<8x8xf32>
    %27 = tpu.matmul %25, %26, %cst_27 {dimension_numbers = #tpu.dot_dimension_numbers<[1], [1], [0], [0], [0, 0, 1, 0], [], []>} : vector<8x8xbf16>, vector<8x8xbf16>, vector<8x8xf32> -> vector<8x8xf32>
    %28 = vector.extract_strided_slice %10 {offsets = [0, 0], sizes = [8, 8], strides = [1, 1]} : vector<8x32xbf16> to vector<8x8xbf16>
    %29 = vector.extract_strided_slice %14 {offsets = [0, 0], sizes = [8, 8], strides = [1, 1]} : vector<8x32xbf16> to vector<8x8xbf16>
    %cst_28 = arith.constant dense<0.000000e+00> : vector<8x8xf32>
    %30 = tpu.matmul %28, %29, %cst_28 {dimension_numbers = #tpu.dot_dimension_numbers<[1], [1], [0], [0], [0, 0, 1, 0], [], []>} : vector<8x8xbf16>, vector<8x8xbf16>, vector<8x8xf32> -> vector<8x8xf32>
    %31 = arith.select %20, %27, %30 : vector<8x8xi1>, vector<8x8xf32>
    %cst_29 = arith.constant 0.353553385 : f32
    %32 = vector.broadcast %cst_29 : f32 to vector<8x8xf32>
    %33 = arith.mulf %31, %32 : vector<8x8xf32>
    %34 = arith.addf %33, %23 : vector<8x8xf32>
    %cst_30 = arith.constant dense<0xFF800000> : vector<8xf32>
    %35 = vector.multi_reduction <maximumf>, %34, %cst_30 [1] : vector<8x8xf32> to vector<8xf32>
    %36 = vector.shape_cast %35 : vector<8xf32> to vector<8x1xf32>
    %37 = vector.broadcast %36 : vector<8x1xf32> to vector<8x8xf32>
    %38 = arith.subf %34, %37 : vector<8x8xf32>
    %39 = math.exp %38 : vector<8x8xf32>
    %cst_31 = arith.constant dense<0.000000e+00> : vector<8xf32>
    %40 = vector.multi_reduction <add>, %39, %cst_31 [1] : vector<8x8xf32> to vector<8xf32>
    %41 = vector.shape_cast %40 : vector<8xf32> to vector<8x1xf32>
    %42 = vector.broadcast %41 : vector<8x1xf32> to vector<8x8xf32>
    %43 = arith.divf %39, %42 : vector<8x8xf32>
    %44 = arith.addf %24, %43 : vector<8x8xf32>
    %45 = arith.truncf %43 : vector<8x8xf32> to vector<8x8xbf16>
    %46 = vector.extract_strided_slice %16 {offsets = [0, 0], sizes = [8, 8], strides = [1, 1]} : vector<8x32xbf16> to vector<8x8xbf16>
    %cst_32 = arith.constant dense<0.000000e+00> : vector<8x8xf32>
    %47 = tpu.matmul %45, %46, %cst_32 {dimension_numbers = #tpu.dot_dimension_numbers<[1], [0], [0], [1], [0, 0, 1, 1], [], []>} : vector<8x8xbf16>, vector<8x8xbf16>, vector<8x8xf32> -> vector<8x8xf32>
    %48 = vector.extract_strided_slice %6 {offsets = [0, 8], sizes = [8, 8], strides = [1, 1]} : vector<8x32xbf16> to vector<8x8xbf16>
    %49 = vector.extract_strided_slice %12 {offsets = [0, 8], sizes = [8, 8], strides = [1, 1]} : vector<8x32xbf16> to vector<8x8xbf16>
    %cst_33 = arith.constant dense<0.000000e+00> : vector<8x8xf32>
    %50 = tpu.matmul %48, %49, %cst_33 {dimension_numbers = #tpu.dot_dimension_numbers<[1], [1], [0], [0], [0, 0, 1, 0], [], []>} : vector<8x8xbf16>, vector<8x8xbf16>, vector<8x8xf32> -> vector<8x8xf32>
    %51 = vector.extract_strided_slice %10 {offsets = [0, 8], sizes = [8, 8], strides = [1, 1]} : vector<8x32xbf16> to vector<8x8xbf16>
    %52 = vector.extract_strided_slice %14 {offsets = [0, 8], sizes = [8, 8], strides = [1, 1]} : vector<8x32xbf16> to vector<8x8xbf16>
    %cst_34 = arith.constant dense<0.000000e+00> : vector<8x8xf32>
    %53 = tpu.matmul %51, %52, %cst_34 {dimension_numbers = #tpu.dot_dimension_numbers<[1], [1], [0], [0], [0, 0, 1, 0], [], []>} : vector<8x8xbf16>, vector<8x8xbf16>, vector<8x8xf32> -> vector<8x8xf32>
    %54 = arith.select %20, %50, %53 : vector<8x8xi1>, vector<8x8xf32>
    %cst_35 = arith.constant 0.353553385 : f32
    %55 = vector.broadcast %cst_35 : f32 to vector<8x8xf32>
    %56 = arith.mulf %54, %55 : vector<8x8xf32>
    %57 = arith.addf %56, %23 : vector<8x8xf32>
    %cst_36 = arith.constant dense<0xFF800000> : vector<8xf32>
    %58 = vector.multi_reduction <maximumf>, %57, %cst_36 [1] : vector<8x8xf32> to vector<8xf32>
    %59 = vector.shape_cast %58 : vector<8xf32> to vector<8x1xf32>
    %60 = vector.broadcast %59 : vector<8x1xf32> to vector<8x8xf32>
    %61 = arith.subf %57, %60 : vector<8x8xf32>
    %62 = math.exp %61 : vector<8x8xf32>
    %cst_37 = arith.constant dense<0.000000e+00> : vector<8xf32>
    %63 = vector.multi_reduction <add>, %62, %cst_37 [1] : vector<8x8xf32> to vector<8xf32>
    %64 = vector.shape_cast %63 : vector<8xf32> to vector<8x1xf32>
    %65 = vector.broadcast %64 : vector<8x1xf32> to vector<8x8xf32>
    %66 = arith.divf %62, %65 : vector<8x8xf32>
    %67 = arith.addf %44, %66 : vector<8x8xf32>
    %68 = arith.truncf %66 : vector<8x8xf32> to vector<8x8xbf16>
    %69 = vector.extract_strided_slice %16 {offsets = [0, 8], sizes = [8, 8], strides = [1, 1]} : vector<8x32xbf16> to vector<8x8xbf16>
    %cst_38 = arith.constant dense<0.000000e+00> : vector<8x8xf32>
    %70 = tpu.matmul %68, %69, %cst_38 {dimension_numbers = #tpu.dot_dimension_numbers<[1], [0], [0], [1], [0, 0, 1, 1], [], []>} : vector<8x8xbf16>, vector<8x8xbf16>, vector<8x8xf32> -> vector<8x8xf32>
    %71 = vector.extract_strided_slice %6 {offsets = [0, 16], sizes = [8, 8], strides = [1, 1]} : vector<8x32xbf16> to vector<8x8xbf16>
    %72 = vector.extract_strided_slice %12 {offsets = [0, 16], sizes = [8, 8], strides = [1, 1]} : vector<8x32xbf16> to vector<8x8xbf16>
    %cst_39 = arith.constant dense<0.000000e+00> : vector<8x8xf32>
    %73 = tpu.matmul %71, %72, %cst_39 {dimension_numbers = #tpu.dot_dimension_numbers<[1], [1], [0], [0], [0, 0, 1, 0], [], []>} : vector<8x8xbf16>, vector<8x8xbf16>, vector<8x8xf32> -> vector<8x8xf32>
    %74 = vector.extract_strided_slice %10 {offsets = [0, 16], sizes = [8, 8], strides = [1, 1]} : vector<8x32xbf16> to vector<8x8xbf16>
    %75 = vector.extract_strided_slice %14 {offsets = [0, 16], sizes = [8, 8], strides = [1, 1]} : vector<8x32xbf16> to vector<8x8xbf16>
    %cst_40 = arith.constant dense<0.000000e+00> : vector<8x8xf32>
    %76 = tpu.matmul %74, %75, %cst_40 {dimension_numbers = #tpu.dot_dimension_numbers<[1], [1], [0], [0], [0, 0, 1, 0], [], []>} : vector<8x8xbf16>, vector<8x8xbf16>, vector<8x8xf32> -> vector<8x8xf32>
    %77 = arith.select %20, %73, %76 : vector<8x8xi1>, vector<8x8xf32>
    %cst_41 = arith.constant 0.353553385 : f32
    %78 = vector.broadcast %cst_41 : f32 to vector<8x8xf32>
    %79 = arith.mulf %77, %78 : vector<8x8xf32>
    %80 = arith.addf %79, %23 : vector<8x8xf32>
    %cst_42 = arith.constant dense<0xFF800000> : vector<8xf32>
    %81 = vector.multi_reduction <maximumf>, %80, %cst_42 [1] : vector<8x8xf32> to vector<8xf32>
    %82 = vector.shape_cast %81 : vector<8xf32> to vector<8x1xf32>
    %83 = vector.broadcast %82 : vector<8x1xf32> to vector<8x8xf32>
    %84 = arith.subf %80, %83 : vector<8x8xf32>
    %85 = math.exp %84 : vector<8x8xf32>
    %cst_43 = arith.constant dense<0.000000e+00> : vector<8xf32>
    %86 = vector.multi_reduction <add>, %85, %cst_43 [1] : vector<8x8xf32> to vector<8xf32>
    %87 = vector.shape_cast %86 : vector<8xf32> to vector<8x1xf32>
    %88 = vector.broadcast %87 : vector<8x1xf32> to vector<8x8xf32>
    %89 = arith.divf %85, %88 : vector<8x8xf32>
    %90 = arith.addf %67, %89 : vector<8x8xf32>
    %91 = arith.truncf %89 : vector<8x8xf32> to vector<8x8xbf16>
    %92 = vector.extract_strided_slice %16 {offsets = [0, 16], sizes = [8, 8], strides = [1, 1]} : vector<8x32xbf16> to vector<8x8xbf16>
    %cst_44 = arith.constant dense<0.000000e+00> : vector<8x8xf32>
    %93 = tpu.matmul %91, %92, %cst_44 {dimension_numbers = #tpu.dot_dimension_numbers<[1], [0], [0], [1], [0, 0, 1, 1], [], []>} : vector<8x8xbf16>, vector<8x8xbf16>, vector<8x8xf32> -> vector<8x8xf32>
    %94 = vector.extract_strided_slice %6 {offsets = [0, 24], sizes = [8, 8], strides = [1, 1]} : vector<8x32xbf16> to vector<8x8xbf16>
    %95 = vector.extract_strided_slice %12 {offsets = [0, 24], sizes = [8, 8], strides = [1, 1]} : vector<8x32xbf16> to vector<8x8xbf16>
    %cst_45 = arith.constant dense<0.000000e+00> : vector<8x8xf32>
    %96 = tpu.matmul %94, %95, %cst_45 {dimension_numbers = #tpu.dot_dimension_numbers<[1], [1], [0], [0], [0, 0, 1, 0], [], []>} : vector<8x8xbf16>, vector<8x8xbf16>, vector<8x8xf32> -> vector<8x8xf32>
    %97 = vector.extract_strided_slice %10 {offsets = [0, 24], sizes = [8, 8], strides = [1, 1]} : vector<8x32xbf16> to vector<8x8xbf16>
    %98 = vector.extract_strided_slice %14 {offsets = [0, 24], sizes = [8, 8], strides = [1, 1]} : vector<8x32xbf16> to vector<8x8xbf16>
    %cst_46 = arith.constant dense<0.000000e+00> : vector<8x8xf32>
    %99 = tpu.matmul %97, %98, %cst_46 {dimension_numbers = #tpu.dot_dimension_numbers<[1], [1], [0], [0], [0, 0, 1, 0], [], []>} : vector<8x8xbf16>, vector<8x8xbf16>, vector<8x8xf32> -> vector<8x8xf32>
    %100 = arith.select %20, %96, %99 : vector<8x8xi1>, vector<8x8xf32>
    %cst_47 = arith.constant 0.353553385 : f32
    %101 = vector.broadcast %cst_47 : f32 to vector<8x8xf32>
    %102 = arith.mulf %100, %101 : vector<8x8xf32>
    %103 = arith.addf %102, %23 : vector<8x8xf32>
    %cst_48 = arith.constant dense<0xFF800000> : vector<8xf32>
    %104 = vector.multi_reduction <maximumf>, %103, %cst_48 [1] : vector<8x8xf32> to vector<8xf32>
    %105 = vector.shape_cast %104 : vector<8xf32> to vector<8x1xf32>
    %106 = vector.broadcast %105 : vector<8x1xf32> to vector<8x8xf32>
    %107 = arith.subf %103, %106 : vector<8x8xf32>
    %108 = math.exp %107 : vector<8x8xf32>
    %cst_49 = arith.constant dense<0.000000e+00> : vector<8xf32>
    %109 = vector.multi_reduction <add>, %108, %cst_49 [1] : vector<8x8xf32> to vector<8xf32>
    %110 = vector.shape_cast %109 : vector<8xf32> to vector<8x1xf32>
    %111 = vector.broadcast %110 : vector<8x1xf32> to vector<8x8xf32>
    %112 = arith.divf %108, %111 : vector<8x8xf32>
    %113 = arith.addf %90, %112 : vector<8x8xf32>
    %114 = arith.truncf %112 : vector<8x8xf32> to vector<8x8xbf16>
    %115 = vector.extract_strided_slice %16 {offsets = [0, 24], sizes = [8, 8], strides = [1, 1]} : vector<8x32xbf16> to vector<8x8xbf16>
    %cst_50 = arith.constant dense<0.000000e+00> : vector<8x8xf32>
    %116 = tpu.matmul %114, %115, %cst_50 {dimension_numbers = #tpu.dot_dimension_numbers<[1], [0], [0], [1], [0, 0, 1, 1], [], []>} : vector<8x8xbf16>, vector<8x8xbf16>, vector<8x8xf32> -> vector<8x8xf32>
    %117 = tpu.concatenate %47, %70, %93, %116 in 1 : vector<8x8xf32>, vector<8x8xf32>, vector<8x8xf32>, vector<8x8xf32> -> vector<8x32xf32>
    %118 = arith.truncf %117 : vector<8x32xf32> to vector<8x32xbf16>
    %c0_51 = arith.constant 0 : index
    %c0_52 = arith.constant 0 : index
    %119 = vector.load %arg7[%c0_51, %c0_52] : memref<32x32xbf16, #tpu.memory_space<vmem>>, vector<32x32xbf16>
    %cst_53 = arith.constant dense<0.000000e+00> : vector<8x32xf32>
    %120 = tpu.matmul %118, %119, %cst_53 {dimension_numbers = #tpu.dot_dimension_numbers<[1], [0], [0], [1], [0, 0, 1, 1], [], []>} : vector<8x32xbf16>, vector<32x32xbf16>, vector<8x32xf32> -> vector<8x32xf32>
    %c0_54 = arith.constant 0 : index
    %c0_55 = arith.constant 0 : index
    %121 = vector.load %arg8[%c0_54, %c0_55] : memref<1x32xf32, #tpu.memory_space<vmem>>, vector<1x32xf32>
    %122 = vector.broadcast %121 : vector<1x32xf32> to vector<8x32xf32>
    %123 = arith.addf %120, %122 : vector<8x32xf32>
    %124 = arith.addf %123, %1 : vector<8x32xf32>
    %cst_56 = arith.constant dense<0.000000e+00> : vector<8xf32>
    %125 = vector.multi_reduction <add>, %124, %cst_56 [1] : vector<8x32xf32> to vector<8xf32>
    %126 = vector.shape_cast %125 : vector<8xf32> to vector<8x1xf32>
    %cst_57 = arith.constant 3.200000e+01 : f32
    %127 = vector.broadcast %cst_57 : f32 to vector<8x1xf32>
    %128 = arith.divf %126, %127 : vector<8x1xf32>
    %129 = vector.broadcast %128 : vector<8x1xf32> to vector<8x32xf32>
    %130 = arith.subf %124, %129 : vector<8x32xf32>
    %131 = arith.mulf %130, %130 : vector<8x32xf32>
    %cst_58 = arith.constant dense<0.000000e+00> : vector<8xf32>
    %132 = vector.multi_reduction <add>, %131, %cst_58 [1] : vector<8x32xf32> to vector<8xf32>
    %133 = vector.shape_cast %132 : vector<8xf32> to vector<8x1xf32>
    %cst_59 = arith.constant 3.200000e+01 : f32
    %134 = vector.broadcast %cst_59 : f32 to vector<8x1xf32>
    %135 = arith.divf %133, %134 : vector<8x1xf32>
    %136 = vector.broadcast %128 : vector<8x1xf32> to vector<8x32xf32>
    %137 = arith.subf %124, %136 : vector<8x32xf32>
    %cst_60 = arith.constant 9.99999974E-6 : f32
    %138 = vector.broadcast %cst_60 : f32 to vector<8x1xf32>
    %139 = arith.addf %135, %138 : vector<8x1xf32>
    %140 = math.rsqrt %139 : vector<8x1xf32>
    %141 = vector.broadcast %140 : vector<8x1xf32> to vector<8x32xf32>
    %142 = arith.mulf %137, %141 : vector<8x32xf32>
    %c0_61 = arith.constant 0 : index
    %c0_62 = arith.constant 0 : index
    %143 = vector.load %arg9[%c0_61, %c0_62] : memref<1x32xf32, #tpu.memory_space<vmem>>, vector<1x32xf32>
    %144 = vector.broadcast %143 : vector<1x32xf32> to vector<8x32xf32>
    %145 = arith.mulf %142, %144 : vector<8x32xf32>
    %c0_63 = arith.constant 0 : index
    %c0_64 = arith.constant 0 : index
    %146 = vector.load %arg10[%c0_63, %c0_64] : memref<1x32xf32, #tpu.memory_space<vmem>>, vector<1x32xf32>
    %147 = vector.broadcast %146 : vector<1x32xf32> to vector<8x32xf32>
    %148 = arith.addf %145, %147 : vector<8x32xf32>
    %c0_65 = arith.constant 0 : index
    %c0_66 = arith.constant 0 : index
    %c0_67 = arith.constant 0 : index
    %149 = vector.load %arg11[%c0_65, %c0_66, %c0_67] : memref<1x8x32xf32, #tpu.memory_space<vmem>>, vector<1x8x32xf32>
    %150 = vector.shape_cast %149 : vector<1x8x32xf32> to vector<8x32xf32>
    %151 = vector.shape_cast %148 : vector<8x32xf32> to vector<1x8x32xf32>
    tpu.vector_store %arg11[%c0_65, %c0_66, %c0_67], %151 {strides = array<i32>} : memref<1x8x32xf32, #tpu.memory_space<vmem>>, vector<1x8x32xf32>,
    %cst_68 = arith.constant 2.500000e-01 : f32
    %152 = vector.broadcast %cst_68 : f32 to vector<8x8xf32>
    %153 = arith.mulf %113, %152 : vector<8x8xf32>
    %c0_69 = arith.constant 0 : index
    %c0_70 = arith.constant 0 : index
    %c0_71 = arith.constant 0 : index
    %154 = vector.load %arg12[%c0_69, %c0_70, %c0_71] : memref<1x8x8xf32, #tpu.memory_space<vmem>>, vector<1x8x8xf32>
    %155 = vector.shape_cast %154 : vector<1x8x8xf32> to vector<8x8xf32>
    %156 = vector.shape_cast %153 : vector<8x8xf32> to vector<1x8x8xf32>
    tpu.vector_store %arg12[%c0_69, %c0_70, %c0_71], %156 {strides = array<i32>} : memref<1x8x8xf32, #tpu.memory_space<vmem>>, vector<1x8x8xf32>,
    return
  }
  func.func @transform_0(%arg0: i32, %arg1: i32) -> (i32, i32, i32) {
    %c0_i32 = arith.constant 0 : i32
    %c0_i32_0 = arith.constant 0 : i32
    return %arg0, %arg1, %c0_i32 : i32, i32, i32
  }
  func.func @transform_1(%arg0: i32, %arg1: i32) -> (i32, i32, i32, i32) {
    %c0_i32 = arith.constant 0 : i32
    %c0_i32_0 = arith.constant 0 : i32
    %c0_i32_1 = arith.constant 0 : i32
    %c0_i32_2 = arith.constant 0 : i32
    return %c0_i32, %arg0, %c0_i32_0, %c0_i32_1 : i32, i32, i32, i32
  }
  func.func @transform_2(%arg0: i32, %arg1: i32) -> (i32, i32, i32) {
    %c0_i32 = arith.constant 0 : i32
    %c0_i32_0 = arith.constant 0 : i32
    %c0_i32_1 = arith.constant 0 : i32
    return %c0_i32, %arg1, %c0_i32_0 : i32, i32, i32
  }
  func.func @transform_3(%arg0: i32, %arg1: i32) -> (i32, i32, i32) {
    %c0_i32 = arith.constant 0 : i32
    %c0_i32_0 = arith.constant 0 : i32
    %c0_i32_1 = arith.constant 0 : i32
    return %c0_i32, %arg1, %c0_i32_0 : i32, i32, i32
  }
  func.func @transform_4(%arg0: i32, %arg1: i32) -> (i32, i32, i32) {
    %c0_i32 = arith.constant 0 : i32
    %c0_i32_0 = arith.constant 0 : i32
    %c0_i32_1 = arith.constant 0 : i32
    %c0_i32_2 = arith.constant 0 : i32
    return %c0_i32, %c0_i32_0, %c0_i32_1 : i32, i32, i32
  }
  func.func @transform_5(%arg0: i32, %arg1: i32) -> (i32, i32) {
    %c0_i32 = arith.constant 0 : i32
    %c0_i32_0 = arith.constant 0 : i32
    %c0_i32_1 = arith.constant 0 : i32
    return %c0_i32, %c0_i32_0 : i32, i32
  }
  func.func @transform_6(%arg0: i32, %arg1: i32) -> (i32, i32) {
    %c0_i32 = arith.constant 0 : i32
    %c0_i32_0 = arith.constant 0 : i32
    %c0_i32_1 = arith.constant 0 : i32
    return %c0_i32, %c0_i32_0 : i32, i32
  }
  func.func @transform_7(%arg0: i32, %arg1: i32) -> (i32, i32) {
    %c0_i32 = arith.constant 0 : i32
    %c0_i32_0 = arith.constant 0 : i32
    %c0_i32_1 = arith.constant 0 : i32
    return %c0_i32, %c0_i32_0 : i32, i32
  }
  func.func @transform_8(%arg0: i32, %arg1: i32) -> (i32, i32) {
    %c0_i32 = arith.constant 0 : i32
    %c0_i32_0 = arith.constant 0 : i32
    %c0_i32_1 = arith.constant 0 : i32
    return %c0_i32, %c0_i32_0 : i32, i32
  }
  func.func @transform_9(%arg0: i32, %arg1: i32) -> (i32, i32, i32) {
    %c0_i32 = arith.constant 0 : i32
    %c0_i32_0 = arith.constant 0 : i32
    return %arg0, %arg1, %c0_i32 : i32, i32, i32
  }
  func.func @transform_10(%arg0: i32, %arg1: i32) -> (i32, i32, i32) {
    %c0_i32 = arith.constant 0 : i32
    %c0_i32_0 = arith.constant 0 : i32
    return %arg0, %arg1, %c0_i32 : i32, i32, i32
  }
}

module attributes {stable_mosaic.version = 11 : i64} {
  func.func @_ffn_ln_kernel(%arg0: i32, %arg1: memref<16x32xf32, #tpu.memory_space<vmem>>, %arg2: memref<32x64xbf16, #tpu.memory_space<vmem>>, %arg3: memref<1x64xf32, #tpu.memory_space<vmem>>, %arg4: memref<64x32xbf16, #tpu.memory_space<vmem>>, %arg5: memref<1x32xf32, #tpu.memory_space<vmem>>, %arg6: memref<1x32xf32, #tpu.memory_space<vmem>>, %arg7: memref<1x32xf32, #tpu.memory_space<vmem>>, %arg8: memref<16x32xf32, #tpu.memory_space<vmem>>) attributes {dimension_semantics = [#tpu.dimension_semantics<parallel>], iteration_bounds = array<i64: 1>, scalar_prefetch = 0 : i64, scratch_operands = 0 : i64, tpu.core_type = #tpu.core_type<tc>, window_params = [{transform_indices = @transform_0, window_bounds = array<i64: 16, 32>}, {pipeline_mode = #tpu.pipeline_mode<synchronous>, transform_indices = @transform_1, window_bounds = array<i64: 32, 64>}, {pipeline_mode = #tpu.pipeline_mode<synchronous>, transform_indices = @transform_2, window_bounds = array<i64: 1, 64>}, {pipeline_mode = #tpu.pipeline_mode<synchronous>, transform_indices = @transform_3, window_bounds = array<i64: 64, 32>}, {pipeline_mode = #tpu.pipeline_mode<synchronous>, transform_indices = @transform_4, window_bounds = array<i64: 1, 32>}, {pipeline_mode = #tpu.pipeline_mode<synchronous>, transform_indices = @transform_5, window_bounds = array<i64: 1, 32>}, {pipeline_mode = #tpu.pipeline_mode<synchronous>, transform_indices = @transform_6, window_bounds = array<i64: 1, 32>}, {transform_indices = @transform_7, window_bounds = array<i64: 16, 32>}]} {
    %c0 = arith.constant 0 : index
    %c0_0 = arith.constant 0 : index
    %0 = vector.load %arg1[%c0, %c0_0] : memref<16x32xf32, #tpu.memory_space<vmem>>, vector<16x32xf32>
    %1 = arith.truncf %0 : vector<16x32xf32> to vector<16x32xbf16>
    %c0_1 = arith.constant 0 : index
    %c0_2 = arith.constant 0 : index
    %2 = vector.load %arg2[%c0_1, %c0_2] : memref<32x64xbf16, #tpu.memory_space<vmem>>, vector<32x64xbf16>
    %cst = arith.constant dense<0.000000e+00> : vector<16x64xf32>
    %3 = tpu.matmul %1, %2, %cst {dimension_numbers = #tpu.dot_dimension_numbers<[1], [0], [0], [1], [0, 0, 1, 1], [], []>} : vector<16x32xbf16>, vector<32x64xbf16>, vector<16x64xf32> -> vector<16x64xf32>
    %c0_3 = arith.constant 0 : index
    %c0_4 = arith.constant 0 : index
    %4 = vector.load %arg3[%c0_3, %c0_4] : memref<1x64xf32, #tpu.memory_space<vmem>>, vector<1x64xf32>
    %5 = vector.broadcast %4 : vector<1x64xf32> to vector<16x64xf32>
    %6 = arith.addf %3, %5 : vector<16x64xf32>
    %cst_5 = arith.constant 0.000000e+00 : f32
    %7 = vector.broadcast %cst_5 : f32 to vector<16x64xf32>
    %8 = arith.maximumf %6, %7 : vector<16x64xf32>
    %9 = arith.truncf %8 : vector<16x64xf32> to vector<16x64xbf16>
    %c0_6 = arith.constant 0 : index
    %c0_7 = arith.constant 0 : index
    %10 = vector.load %arg4[%c0_6, %c0_7] : memref<64x32xbf16, #tpu.memory_space<vmem>>, vector<64x32xbf16>
    %cst_8 = arith.constant dense<0.000000e+00> : vector<16x32xf32>
    %11 = tpu.matmul %9, %10, %cst_8 {dimension_numbers = #tpu.dot_dimension_numbers<[1], [0], [0], [1], [0, 0, 1, 1], [], []>} : vector<16x64xbf16>, vector<64x32xbf16>, vector<16x32xf32> -> vector<16x32xf32>
    %c0_9 = arith.constant 0 : index
    %c0_10 = arith.constant 0 : index
    %12 = vector.load %arg5[%c0_9, %c0_10] : memref<1x32xf32, #tpu.memory_space<vmem>>, vector<1x32xf32>
    %13 = vector.broadcast %12 : vector<1x32xf32> to vector<16x32xf32>
    %14 = arith.addf %11, %13 : vector<16x32xf32>
    %15 = arith.addf %14, %0 : vector<16x32xf32>
    %cst_11 = arith.constant dense<0.000000e+00> : vector<16xf32>
    %16 = vector.multi_reduction <add>, %15, %cst_11 [1] : vector<16x32xf32> to vector<16xf32>
    %17 = vector.shape_cast %16 : vector<16xf32> to vector<16x1xf32>
    %cst_12 = arith.constant 3.200000e+01 : f32
    %18 = vector.broadcast %cst_12 : f32 to vector<16x1xf32>
    %19 = arith.divf %17, %18 : vector<16x1xf32>
    %20 = vector.broadcast %19 : vector<16x1xf32> to vector<16x32xf32>
    %21 = arith.subf %15, %20 : vector<16x32xf32>
    %22 = arith.mulf %21, %21 : vector<16x32xf32>
    %cst_13 = arith.constant dense<0.000000e+00> : vector<16xf32>
    %23 = vector.multi_reduction <add>, %22, %cst_13 [1] : vector<16x32xf32> to vector<16xf32>
    %24 = vector.shape_cast %23 : vector<16xf32> to vector<16x1xf32>
    %cst_14 = arith.constant 3.200000e+01 : f32
    %25 = vector.broadcast %cst_14 : f32 to vector<16x1xf32>
    %26 = arith.divf %24, %25 : vector<16x1xf32>
    %27 = vector.broadcast %19 : vector<16x1xf32> to vector<16x32xf32>
    %28 = arith.subf %15, %27 : vector<16x32xf32>
    %cst_15 = arith.constant 9.99999974E-6 : f32
    %29 = vector.broadcast %cst_15 : f32 to vector<16x1xf32>
    %30 = arith.addf %26, %29 : vector<16x1xf32>
    %31 = math.rsqrt %30 : vector<16x1xf32>
    %32 = vector.broadcast %31 : vector<16x1xf32> to vector<16x32xf32>
    %33 = arith.mulf %28, %32 : vector<16x32xf32>
    %c0_16 = arith.constant 0 : index
    %c0_17 = arith.constant 0 : index
    %34 = vector.load %arg6[%c0_16, %c0_17] : memref<1x32xf32, #tpu.memory_space<vmem>>, vector<1x32xf32>
    %35 = vector.broadcast %34 : vector<1x32xf32> to vector<16x32xf32>
    %36 = arith.mulf %33, %35 : vector<16x32xf32>
    %c0_18 = arith.constant 0 : index
    %c0_19 = arith.constant 0 : index
    %37 = vector.load %arg7[%c0_18, %c0_19] : memref<1x32xf32, #tpu.memory_space<vmem>>, vector<1x32xf32>
    %38 = vector.broadcast %37 : vector<1x32xf32> to vector<16x32xf32>
    %39 = arith.addf %36, %38 : vector<16x32xf32>
    %c0_20 = arith.constant 0 : index
    %c0_21 = arith.constant 0 : index
    %40 = vector.load %arg8[%c0_20, %c0_21] : memref<16x32xf32, #tpu.memory_space<vmem>>, vector<16x32xf32>
    tpu.vector_store %arg8[%c0_20, %c0_21], %39 {strides = array<i32>} : memref<16x32xf32, #tpu.memory_space<vmem>>, vector<16x32xf32>,
    return
  }
  func.func @transform_0(%arg0: i32) -> (i32, i32) {
    %c0_i32 = arith.constant 0 : i32
    %c0_i32_0 = arith.constant 0 : i32
    return %arg0, %c0_i32 : i32, i32
  }
  func.func @transform_1(%arg0: i32) -> (i32, i32) {
    %c0_i32 = arith.constant 0 : i32
    %c0_i32_0 = arith.constant 0 : i32
    %c0_i32_1 = arith.constant 0 : i32
    return %c0_i32, %c0_i32_0 : i32, i32
  }
  func.func @transform_2(%arg0: i32) -> (i32, i32) {
    %c0_i32 = arith.constant 0 : i32
    %c0_i32_0 = arith.constant 0 : i32
    %c0_i32_1 = arith.constant 0 : i32
    return %c0_i32, %c0_i32_0 : i32, i32
  }
  func.func @transform_3(%arg0: i32) -> (i32, i32) {
    %c0_i32 = arith.constant 0 : i32
    %c0_i32_0 = arith.constant 0 : i32
    %c0_i32_1 = arith.constant 0 : i32
    return %c0_i32, %c0_i32_0 : i32, i32
  }
  func.func @transform_4(%arg0: i32) -> (i32, i32) {
    %c0_i32 = arith.constant 0 : i32
    %c0_i32_0 = arith.constant 0 : i32
    %c0_i32_1 = arith.constant 0 : i32
    return %c0_i32, %c0_i32_0 : i32, i32
  }
  func.func @transform_5(%arg0: i32) -> (i32, i32) {
    %c0_i32 = arith.constant 0 : i32
    %c0_i32_0 = arith.constant 0 : i32
    %c0_i32_1 = arith.constant 0 : i32
    return %c0_i32, %c0_i32_0 : i32, i32
  }
  func.func @transform_6(%arg0: i32) -> (i32, i32) {
    %c0_i32 = arith.constant 0 : i32
    %c0_i32_0 = arith.constant 0 : i32
    %c0_i32_1 = arith.constant 0 : i32
    return %c0_i32, %c0_i32_0 : i32, i32
  }
  func.func @transform_7(%arg0: i32) -> (i32, i32) {
    %c0_i32 = arith.constant 0 : i32
    %c0_i32_0 = arith.constant 0 : i32
    return %arg0, %c0_i32 : i32, i32
  }
}

</mosaic_0001>

<bundles_post_ra>
// kernel: decoder_layer_forward.5
= control target key start
LH: loop header
LB: loop body
LE: loop exit
PB: predicated region body
PF: predicated region fallthrough
CT: control target
= control target key end

     0   :  { %v303_v0 = vmov 0.0   ;;  %vm304_vm0 = vmmov 0   ;;  %vm31_vm1 = vcmask 261120   ;;  %vm84_vm2 = vcmask 257024   ;;  %s371_s1 = inlined_call_operand.vmem [shape: bf16[3,32,32], index: 1, kind: input, shape index: {}]   ;;  %s372_s0 = inlined_call_operand.vmem [shape: f32[16,32], index: 0, kind: input, shape index: {}]   ;;  %s373_s2 = inlined_call_operand.vmem [shape: bf16[3,16,32], index: 2, kind: output, shape index: {}]  }
   0x1   :  { %271 = vmatprep.subr.bf16.mxu0 %v303_v0  ;;  %v297_v1 = vld [vmem:[%s371_s1] sm:$0xff]   ;;  %279 = vmatprep.subr.bf16.mxu1 %v303_v0  ;;  %v298_v2 = vld [vmem:[%s371_s1 + $0x8] sm:$0xff]   ;;  %v299_v3 = vld [vmem:[%s371_s1 + $0x10] sm:$0xff]  }
   0x2   :  { %275 = vmatprep.mubr.msk.bf16.mxu0 %vm304_vm0, %v303_v0  ;;  %283 = vmatprep.mubr.msk.bf16.mxu1 %vm304_vm0, %v303_v0  ;;  %v12_v4 = vld [vmem:[%s372_s0] sm:$0xff]  ;;  %v13_v5 = vld [vmem:[%s372_s0 + $0x8] sm:$0xff]  ;;  %v301_v7 = vld [vmem:[%s371_s1 + $0x18] sm:$0xff]  }
   0x3   :  { %272 = vmatpush3.bf16.msra.mxu0 %v297_v1  ;;  %280 = vmatpush3.bf16.msra.mxu1 %v299_v3  ;;  %v14_v6 = vpack.c.bf16 %v13_v5, %v12_v4  ;;  %v300_v8 = vld [vmem:[%s371_s1 + $0x20] sm:$0xff]   ;;  %v302_v9 = vld [vmem:[%s371_s1 + $0x28] sm:$0xff]  }
   0x4   :  { %273 = vmatprep.subr.bf16.mxu0 %v303_v0  ;;  %281 = vmatprep.subr.bf16.mxu1 %v303_v0 }
   0x7   :  { %274 = vmatpush3.bf16.msra.mxu0 %v298_v2  ;;  %282 = vmatpush3.bf16.msra.mxu1 %v301_v7 }
   0x8   :  { %287 = vmatprep.subr.bf16.mxu0 %v303_v0 }
   0xa   :  { %276 = vmatmul.mubr.msk.bf16.vlgmr.msra.gmra.mrb[0].mxu0 %vm31_vm1, %v14_v6  ;;  %284 = vmatmul.mubr.msk.bf16.vlgmr.msra.gmra.mrb[0].mxu1 %vm31_vm1, %v14_v6 }
   0xb   :  { %288 = vmatpush3.bf16.msra.mxu0 %v300_v8  ;;  %291 = vmatprep.mubr.msk.bf16.mxu0 %vm304_vm0, %v303_v0 }
   0xc   :  { %289 = vmatprep.subr.bf16.mxu0 %v303_v0 }
   0xf   :  { %290 = vmatpush3.bf16.msra.mxu0 %v302_v9 }
  0x12   :  { %292 = vmatmul.mubr.msk.bf16.vlgmr.msra.gmra.mrb[4].mxu0 %vm31_vm1, %v14_v6 }
  0xdd   :  { %v69_v10 = vpop.f32.mrb[0].mxu0  ;;  %v138_v14 = vpop.f32.mrb[0].mxu1 }
  0xde   :  { %v256_v11 = vpack.c.bf16 %v69_v10, %v69_v10  ;;  %v277_v12 = vpop.f32.mrb[1].mxu0  ;;  %v258_v17 = vpack.c.bf16 %v138_v14, %v138_v14  ;;  %v285_v18 = vpop.f32.mrb[1].mxu1 }
  0xdf   :  { %v72_v13 = vpop.f32.mrb[2].mxu0  ;;  %v141_v19 = vpop.f32.mrb[2].mxu1 }
  0xe0   :  { %85 = vst.msk [vmem:[%s373_s2] sm:$0xf] %vm84_vm2, %v256_v11  ;;  %v257_v15 = vpack.c.bf16 %v72_v13, %v72_v13  ;;  %v278_v16 = vpop.f32.mrb[3].mxu0  ;;  %243 = vst.msk [vmem:[%s373_s2 + $0x8] sm:$0xf] %vm84_vm2, %v258_v17  ;;  %v259_v20 = vpack.c.bf16 %v141_v19, %v141_v19  ;;  %v286_v21 = vpop.f32.mrb[3].mxu1 }
  0xe2   :  { %86 = vst.msk [vmem:[%s373_s2 + $0x4] sm:$0xf] %vm84_vm2, %v257_v15  ;;  %244 = vst.msk [vmem:[%s373_s2 + $0xc] sm:$0xf] %vm84_vm2, %v259_v20 }
  0xe5   :  { %v207_v22 = vpop.f32.mrb[4].mxu0 }
  0xe6   :  { %v260_v23 = vpack.c.bf16 %v207_v22, %v207_v22  ;;  %v293_v24 = vpop.f32.mrb[5].mxu0 }
  0xe7   :  { %v210_v25 = vpop.f32.mrb[6].mxu0 }
  0xe8   :  { %254 = vst.msk [vmem:[%s373_s2 + $0x10] sm:$0xf] %vm84_vm2, %v260_v23  ;;  %v261_v26 = vpack.c.bf16 %v210_v25, %v210_v25  ;;  %v294_v27 = vpop.f32.mrb[7].mxu0 }
  0xea   :  { %255 = vst.msk [vmem:[%s373_s2 + $0x14] sm:$0xf] %vm84_vm2, %v261_v26 }

// kernel: decoder_layer_forward.6
= control target key start
LH: loop header
LB: loop body
LE: loop exit
PB: predicated region body
PF: predicated region fallthrough
CT: control target
= control target key end

     0   :  { %s2342_s0 = inlined_call_operand.vmem [shape: f32[2,8,32], index: 0, kind: input, shape index: {}]   ;;  %s2343_s1 = inlined_call_operand.vmem [shape: bf16[3,2,8,32], index: 1, kind: input, shape index: {}]   ;;  %s2344_s2 = inlined_call_operand.vmem [shape: bf16[1,8,8], index: 2, kind: input, shape index: {}]   ;;  %s2345_s3 = inlined_call_operand.vmem [shape: bf16[1,8,8], index: 3, kind: input, shape index: {}]   ;;  %s2346_s4 = inlined_call_operand.vmem [shape: bf16[2,32,32], index: 4, kind: input, shape index: {}]   ;;  %s2347_s5 = inlined_call_operand.vmem [shape: bf16[32,32], index: 5, kind: input, shape index: {}]   ;;  %s2348_s6 = inlined_call_operand.vmem [shape: f32[1,32], index: 6, kind: input, shape index: {}]   ;;  %s2349_s7 = inlined_call_operand.vmem [shape: f32[1,32], index: 7, kind: input, shape index: {}]   ;;  %s2350_s8 = inlined_call_operand.vmem [shape: f32[1,32], index: 8, kind: input, shape index: {}]   ;;  %s2351_s9 = inlined_call_operand.vmem [shape: f32[2,8,32], index: 9, kind: output, shape index: {0}]   ;;  %s2352_s10 = inlined_call_operand.hbm [shape: f32[2,8,8], index: 10, kind: output, shape index: {1}]  }
   0x1   :  { %2354 = sst [smem:[#allocation6_spill]] %s2342_s0 }
   0x2   :  { %2355 = sst [smem:[#allocation7_spill]] %s2343_s1 }
   0x3   :  { %2356 = sst [smem:[#allocation8_spill]] %s2344_s2 }
   0x4   :  { %16 = vsyncpa [#allocation4], 0 }
   0x5   :  { %18 = vsyncpa [#allocation4 + $0x1], 0  ;;  %s2005_s13 = smov 0   ;;  %s2007_s14 = smov 0  }
   0x6   :  { %s2009_s15 = smov 0   ;;  %s2011_s16 = smov 0  }
   0x7   :  { %s2013_s17 = smov 0   ;;  %s2015_s18 = smov 0  }
   0x8 LB: > { %s1590_s19 = sadd.s32 4294967295, %s1938_s18   ;;  %s1591_s20 = sadd.s32 4294967294, %s1938_s18   ;;  %s1938_s18 = sphi %s2015_s18, %s24_s18   ;;  %s1934_s17 = sphi %s2013_s17, %s2369_s17   ;;  %s1930_s16 = sphi %s2011_s16, %s2368_s16   ;;  %s1926_s15 = sphi %s2009_s15, %s2367_s15   ;;  %s1922_s14 = sphi %s2007_s14, %s2366_s14   ;;  %s1918_s13 = sphi %s2005_s13, %s2365_s13  }
   0x9   : > { %s36_s21 = sadd.s32 1, %s1934_s17  ;;  %s71_s22 = sadd.s32 1, %s1926_s15 }
   0xa   : > { %p38_p0 = scmp.ge.s32.totalorder %s36_s21, 2  ;;  %p78_p1 = scmp.ne.s32.totalorder %s1926_s15, %s1922_s14 }
   0xb   : > { %p79_p2 = scmp.eq.s32.totalorder %s1938_s18, 0  ;;  %p295_p3 = scmp.eq.s32.totalorder %s1590_s19, 1 }
   0xc   : > { %s2371_s21 = smov (%p38_p0, %s36_s21), 0  ;;  %p300_p6 = scmp.ne.s32.totalorder %s1922_s14, %s1918_s13 }
   0xd   : > { %p80_p4 = por %p79_p2, %p78_p1  ;;  %p2044_p5 = por %p295_p3, %p78_p1 }
   0xe   : > { %s68_s24 = ssub.s32 %s1934_s17, %s2371_s21  ;;  %p301_p8 = scmp.eq.s32.totalorder %s1591_s20, 1 }
   0xf   : > { %p69_p7 = scmp.eq.s32.totalorder %s68_s24, 0  ;;  %p1595_p10 = scmp.ge.s32.totalorder %s1938_s18, 2 }
  0x10   : > { %p2055_p9 = por %p301_p8, %p300_p6 }
  0x11   : > { %s2053_s25 = scalar_select %p69_p7, %s1926_s15, %s71_s22  }
  0x12   : > { %346 = sbr.rel (%p1595_p10) target bundleno = 37 (0x25), region = 44 }
  0x19   : > { %359 = sbr.rel (!%p80_p4) target bundleno = 37 (0x25), region = 52  ;;  %s361_s27 = sand.u32 (%p80_p4), 1, %s1926_s15  }
  0x1a   : > { %s1596_s28 = sshll.u32 (%p80_p4), %s1934_s17, 2  ;;  %s1767_s29 = smul.u32 (%p80_p4), 12, %s361_s27 }
  0x1b   : > { %s2359_s1 = sld [smem:[#allocation7_spill]] (%p80_p4) }
  0x1c   : > { %s363_s19 = scalar_lea.vmem (%p80_p4), [#allocation2], %s1767_s29 }
  0x21   : > { %s365_s12 = scalar_lea.vmem %s2359_s1, %s1596_s28 }
  0x22   : > { %v381_v0 = vld [vmem:[%s365_s12] sm:$0xf]  ;;  %v383_v1 = vld [vmem:[%s365_s12 + $0x8] sm:$0xf]  ;;  %v385_v2 = vld [vmem:[%s365_s12 + $0x10] sm:$0xf] }
  0x23   : > { %382 = vst [vmem:[%s363_s19] sm:$0xf] %v381_v0  ;;  %384 = vst [vmem:[%s363_s19 + $0x4] sm:$0xf] %v383_v1 }
  0x24   : > { %386 = vst [vmem:[%s363_s19 + $0x8] sm:$0xf] %v385_v2 }
  0x25 PF: > { %p1597_p11 = scmp.ge.s32.totalorder %s1938_s18, 1  ;;  %p414_p12 = scmp.lt.s32.totalorder %s1938_s18, 3 }
  0x27   : > { %p415_p13 = pnand %p1597_p11, %p414_p12 }
  0x28   : > { %v1833_v3 = vld [vmem:[%s2346_s4] sm:$0xff] (!%p415_p13)   ;;  %v1940_v4 = vmov (!%p415_p13), 0.0   ;;  %v1834_v5 = vld [vmem:[%s2346_s4 + $0x10] sm:$0xff] (!%p415_p13)   ;;  %v1835_v6 = vld [vmem:[%s2346_s4 + $0x8] sm:$0xff] (!%p415_p13)   ;;  %vm1941_vm0 = vmmov (!%p415_p13), 0   ;;  %p480_p0 = scmp.lt.s32.totalorder (!%p415_p13), %s1930_s16, 1 }
  0x29   : > { %418 = sbr.rel (%p415_p13) target bundleno = 3286 (0xcd6), region = 93  ;;  %1671 = vmatprep.subr.bf16.mxu0 (!%p415_p13), %v1940_v4  ;;  %1679 = vmatprep.subr.bf16.mxu1 (!%p415_p13), %v1940_v4  ;;  %v1836_v7 = vld [vmem:[%s2346_s4 + $0x18] sm:$0xff] (!%p415_p13)   ;;  %s2094_s19 = sand.u32 (!%p415_p13), 1, %s1922_s14   ;;  %vm523_vm1 = vcmask (!%p415_p13), 261120   ;;  %vm635_vm2 = vcmask (!%p415_p13), 64512   ;;  %v1943_v29 = vmov (!%p415_p13), 0  }
  0x2a   : > { %1672 = vmatpush3.bf16.msra.mxu0 (!%p415_p13), %v1833_v3  ;;  %1675 = vmatprep.mubr.msk.bf16.mxu0 (!%p415_p13), %vm1941_vm0, %v1940_v4  ;;  %s1768_s22 = smul.u32 (!%p415_p13), 12, %s2094_s19  ;;  %s2360_s0 = sld [smem:[#allocation6_spill]] (!%p415_p13)  ;;  %v633_v32 = vld [vmem:[%s2345_s3] sm:$0xf] (!%p415_p13)  ;;  %vm750_vm5 = vcmask (!%p415_p13), 1043456   ;;  %vm1310_vm6 = vcmask (!%p415_p13), 130048  }
  0x2b   : > { %1680 = vmatpush3.bf16.msra.mxu1 (!%p415_p13), %v1834_v5  ;;  %1673 = vmatprep.subr.bf16.mxu0 (!%p415_p13), %v1940_v4  ;;  %s1942_s30 = smov (!%p415_p13), 120   ;;  %s2361_s2 = sld [smem:[#allocation8_spill]] (!%p415_p13)  ;;  %v2157_v37 = vunpack.c.l.bf16 (!%p415_p13), %v633_v32  ;;  %vm1312_vm7 = vcmask (!%p415_p13), 195584  }
  0x2c   : > { %1681 = vmatprep.subr.bf16.mxu1 (!%p415_p13), %v1940_v4  ;;  %1683 = vmatprep.mubr.msk.bf16.mxu1 (!%p415_p13), %vm1941_vm0, %v1940_v4  ;;  %s2109_s29 = scalar_lea.vmem (!%p415_p13), [#allocation2], %s1768_s22  ;;  %s1947_s11 = smov (!%p415_p13), 16  }
  0x2d   : > { %v626_v10 = vld [vmem:[%s2109_s29] sm:$0xf] (!%p415_p13)  ;;  %v1611_v11 = vld [vmem:[%s2109_s29 + $0x4] sm:$0xf] (!%p415_p13)  ;;  %v1612_v52 = vld [vmem:[%s2109_s29 + $0x8] sm:$0xf] (!%p415_p13) }
  0x2e   : > { %1674 = vmatpush3.bf16.msra.mxu0 (!%p415_p13), %v1835_v6  ;;  %v2113_v12 = vcombine.low (!%p415_p13), %v626_v10, %v626_v10  ;;  %v640_v13 = vsel (!%p415_p13), %vm635_vm2, %v626_v10, 0  ;;  %v2120_v14 = vcombine.low (!%p415_p13), %v1611_v11, %v1611_v11  ;;  %v686_v15 = vsel (!%p415_p13), %vm635_vm2, %v1611_v11, 0  ;;  %s1945_s29 = smov (!%p415_p13), 104   ;;  %s1598_s22 = sshll.u32 (!%p415_p13), %s2094_s19, 3 }
  0x2f   : > { %1682 = vmatpush3.bf16.msra.mxu1 (!%p415_p13), %v1836_v7  ;;  %1687 = vmatprep.subr.bf16.mxu0 (!%p415_p13), %v1940_v4  ;;  %v752_v53 = vsel (!%p415_p13), %vm750_vm5, %v1612_v52, 0  ;;  %s2262_s24 = scalar_lea.vmem (!%p415_p13), [#allocation3], %s1598_s22  ;;  %s1423_s27 = scalar_lea.sflag (!%p415_p13), [#allocation4], %s2094_s19 }
  0x30   : > { %s2091_s12 = scalar_select %p480_p0, %s1930_s16, 1  ;;  %1693 = vmatprep.subr.bf16.mxu1 %v1940_v4  ;;  %800 = vrot.lane.b32.xlu1 %v2113_v12, %s1942_s30 }
  0x31   : > { %v631_v28 = vld [vmem:[%s2361_s2] sm:$0xf] }
  0x32   : > { %s2353_s20 = sshll.u32 %s2091_s12, 3  ;;  %vm632_vm3 = vcmp.ne.bf16.partialorder %v631_v28, 0 }
  0x33   : > { %s486_s28 = scalar_lea.vmem %s2360_s0, %s2353_s20  ;;  %v728_v30 = vsel %vm632_vm3, 65537, %v1943_v29  ;;  %s1949_s0 = smov [#allocation3]  }
  0x34   : > { %v2104_v8 = vld [vmem:[%s486_s28] sm:$0xff]  ;;  %854 = vrot.lane.b32.xlu1 %v2120_v14, %s1942_s30  ;;  %v729_v31 = vunpack.c.l.b16 %v728_v30  ;;  %s1944_s28 = smov 112   ;;  %s1864_s1 = sshll.u32 %s1949_s0, 4  ;;  %s1865_s1 = int_to_ptr.vmem [resolvable:$false] %s1864_s1 }
  0x35   : > { %v506_v9 = vpack.c.bf16 %v2104_v8, %v2104_v8  ;;  %s1866_s2 = scalar_lea.vmem %s1865_s1, 256 }
  0x36   : > { %vm2153_vm4 = vcmp.ne.s32.totalorder %v729_v31, 0 }
  0x37   : > { %1676 = vmatmul.mubr.msk.bf16.vlgmr.msra.gmra.mrb[0].mxu0 %vm523_vm1, %v506_v9  ;;  %1684 = vmatmul.mubr.msk.bf16.vlgmr.msra.gmra.mrb[0].mxu1 %vm523_vm1, %v506_v9 }
  0x38   : > { %1689 = vmatprep.mubr.msk.bf16.mxu0 %vm1941_vm0, %v1940_v4  ;;  %1695 = vmatprep.mubr.msk.bf16.mxu1 %vm1941_vm0, %v1940_v4 }
  0x39   : > { %1688 = vmatpush3.bf16.xpose.msra.mxu0 %v640_v13  ;;  %1694 = vmatpush3.bf16.xpose.msra.mxu1 %v686_v15 }
  0x3a   : > { %1705 = vmatprep.subr.bf16.mxu1 %v1940_v4  ;;  %1699 = vmatprep.subr.bf16.mxu0 %v1940_v4 }
  0xa2   : > { %v801_v16 = vpop.permute.xlu1 %800 }
  0xa3   : > { %v806_v23 = vsel %vm635_vm2, %v801_v16, 0 }
  0xa6   : > { %v855_v58 = vpop.permute.xlu1 %854 }
  0xa7   : > { %v860_v59 = vsel %vm635_vm2, %v855_v58, 0 }
 0x10a   : > { %v561_v17 = vpop.f32.mrb[0].mxu0  ;;  %v619_v18 = vpop.f32.mrb[0].mxu1 }
 0x10b   : > { %v2131_v19 = vpack.c.bf16 %v561_v17, %v561_v17  ;;  %v2133_v20 = vpack.c.bf16 %v619_v18, %v619_v18  ;;  %v1677_v21 = vpop.f32.mrb[1].mxu0  ;;  %v1685_v22 = vpop.f32.mrb[1].mxu1  ;;  %v2190_v18 = vcombine.low %v1612_v52, %v1612_v52 }
 0x10c   : > { %v564_v24 = vpop.f32.mrb[2].mxu0  ;;  %v622_v25 = vpop.f32.mrb[2].mxu1 }
 0x10d   : > { %v1678_v26 = vpop.f32.mrb[3].mxu0  ;;  %v1686_v27 = vpop.f32.mrb[3].mxu1  ;;  %1696 = vmatmul.mubr.msk.bf16.vlgmr.msra.gmra.mrb[4].mxu1 %vm635_vm2, %v2133_v20  ;;  %849 = vrot.lane.b32.xlu1 %v2133_v20, %s1942_s30 }
 0x10e   : > { %1690 = vmatmul.mubr.msk.bf16.vlgmr.msra.gmra.mrb[4].mxu0 %vm635_vm2, %v2131_v19  ;;  %1706 = vmatpush3.bf16.xpose.msra.mxu1 %v806_v23 }
 0x10f   : > { %1707 = vmatprep.mubr.msk.bf16.mxu1 %vm1941_vm0, %v1940_v4  ;;  %1701 = vmatprep.mubr.msk.bf16.mxu0 %vm1941_vm0, %v1940_v4 }
 0x110   : > { %1717 = vmatprep.subr.bf16.mxu1 %v1940_v4  ;;  %1700 = vmatpush3.bf16.msra.mxu0 %v752_v53 }
 0x111   : > { %1711 = vmatprep.subr.bf16.mxu0 %v1940_v4 }
 0x17f   : > { %v850_v61 = vpop.permute.xlu1 %849 }
 0x1e0   : > { %v722_v34 = vpop.f32.mrb[4].mxu1 }
 0x1e1   : > { %v676_v35 = vpop.f32.mrb[4].mxu0  ;;  %v1697_v36 = vpop.f32.mrb[5].mxu1 }
 0x1e2   : > { %v731_v38 = vsel %vm2153_vm4, %v676_v35, %v722_v34  ;;  %v1691_v39 = vpop.f32.mrb[5].mxu0  ;;  %v725_v40 = vpop.f32.mrb[6].mxu1 }
 0x1e3   : > { %v732_v41 = vmul.f32 0.35355338, %v731_v38  ;;  %v679_v42 = vpop.f32.mrb[6].mxu0  ;;  %v1698_v43 = vpop.f32.mrb[7].mxu1 }
 0x1e4   : > { %v1692_v44 = vpop.f32.mrb[7].mxu0 }
 0x1e5   : > { %v733_v45 = vadd.f32 %v732_v41, %v2157_v37 }
 0x1e7   : > { %v734_v46 = vsel %vm635_vm2, %v733_v45, -inf }
 0x1e8   : > { %735 = vmax.xlane.f32.xlu0 %v734_v46 }
 0x275   : > { %v736_v47 = vpop.xlane.xlu0 %735 }
 0x276   : > { %v737_v48 = vsub.f32 %v733_v45, %v736_v47 }
 0x278   : > { %v738_v49 = vmul.f32 1.442695, %v737_v48 }
 0x27a   : > { %1842 = vpow2.f32 %v738_v49 }
 0x284   : > { %v1843_v50 = vpop.eup %1842 }
 0x285   : > { %v740_v51 = vsel %vm635_vm2, %v1843_v50, 0.0 }
 0x286   : > { %741 = vadd.xlane.f32.xlu0 %v740_v51 }
 0x29c   : > { %795 = vrot.lane.b32.xlu0 %v2131_v19, %s1942_s30 }
 0x313   : > { %v742_v54 = vpop.xlane.xlu0 %741 }
 0x314   : > { %1844 = vrcp.f32 %v742_v54 }
 0x317   : > { %v796_v55 = vpop.permute.xlu0 %795 }
 0x318   : > { %1708 = vmatmul.mubr.msk.bf16.vlgmr.msra.gmra.mrb[8].mxu1 %vm635_vm2, %v796_v55 }
 0x319   : > { %1719 = vmatprep.mubr.msk.bf16.mxu1 %vm1941_vm0, %v1940_v4 }
 0x31e   : > { %v1845_v56 = vpop.eup %1844 }
 0x31f   : > { %v2172_v57 = vmul.f32 %v1845_v56, %v1843_v50 }
 0x321   : > { %v746_v60 = vpack.c.bf16 %v2172_v57, %v2172_v57 }
 0x323   : > { %1702 = vmatmul.mubr.msk.bf16.vlgmr.msra.gmra.mrb[8].mxu0 %vm635_vm2, %v746_v60 }
 0x324   : > { %1712 = vmatpush3.bf16.xpose.msra.mxu0 %v860_v59  ;;  %1713 = vmatprep.mubr.msk.bf16.mxu0 %vm1941_vm0, %v1940_v4 }
 0x325   : > { %1723 = vmatprep.subr.bf16.mxu0 %v1940_v4 }
 0x32b   : > { %1714 = vmatmul.mubr.msk.bf16.vlgmr.msra.gmra.mrb[12].mxu0 %vm635_vm2, %v850_v61 }
 0x32c   : > { %1725 = vmatprep.mubr.msk.bf16.mxu0 %vm1941_vm0, %v1940_v4 }
 0x3eb   : > { %v842_v62 = vpop.f32.mrb[8].mxu1 }
 0x3ec   : > { %v1709_v63 = vpop.f32.mrb[9].mxu1 }
 0x3ed   : > { %v845_v0 = vpop.f32.mrb[10].mxu1 }
 0x3ee   : > { %v1710_v1 = vpop.f32.mrb[11].mxu1 }
 0x3f6   : > { %v2184_v2 = vpop.f32.mrb[8].mxu0 }
 0x3f7   : > { %v1703_v3 = vpop.f32.mrb[9].mxu0 }
 0x3f8   : > { %v791_v5 = vpop.f32.mrb[10].mxu0 }
 0x3f9   : > { %v1704_v6 = vpop.f32.mrb[11].mxu0 }
 0x3fe   : > { %v896_v7 = vpop.f32.mrb[12].mxu0 }
 0x3ff   : > { %v902_v9 = vsel %vm2153_vm4, %v842_v62, %v896_v7  ;;  %v1715_v10 = vpop.f32.mrb[13].mxu0 }
 0x400   : > { %v903_v11 = vmul.f32 0.35355338, %v902_v9  ;;  %v899_v13 = vpop.f32.mrb[14].mxu0 }
 0x401   : > { %v1716_v15 = vpop.f32.mrb[15].mxu0 }
 0x402   : > { %v904_v16 = vadd.f32 %v903_v11, %v2157_v37 }
 0x404   : > { %v905_v17 = vsel %vm635_vm2, %v904_v16, -inf }
 0x405   : > { %906 = vmax.xlane.f32.xlu1 %v905_v17 }
 0x416   : > { %921 = vrot.lane.b32.xlu1 %v2190_v18, %s1942_s30  ;;  %s1946_s30 = smov 8  }
 0x41a   : > { %1021 = vrot.lane.b32.xlu1 %v2120_v14, %s1944_s28 }
 0x41e   : > { %969 = vrot.lane.b32.xlu1 %v2131_v19, %s1944_s28 }
 0x422   : > { %1019 = vrot.lane.b32.xlu1 %v2133_v20, %s1944_s28 }
 0x492   : > { %v907_v21 = vpop.xlane.xlu1 %906 }
 0x493   : > { %v908_v22 = vsub.f32 %v904_v16, %v907_v21 }
 0x495   : > { %v909_v23 = vmul.f32 1.442695, %v908_v22 }
 0x496   : > { %v922_v24 = vpop.permute.xlu1 %921 }
 0x497   : > { %1846 = vpow2.f32 %v909_v23  ;;  %v927_v25 = vsel %vm750_vm5, %v922_v24, 0 }
 0x498   : > { %1718 = vmatpush3.bf16.msra.mxu1 %v927_v25 }
 0x499   : > { %1729 = vmatprep.subr.bf16.mxu1 %v1940_v4 }
 0x49a   : > { %v1022_v31 = vpop.permute.xlu1 %1021 }
 0x49b   : > { %v1027_v36 = vsel %vm635_vm2, %v1022_v31, 0 }
 0x49e   : > { %v970_v34 = vpop.permute.xlu1 %969 }
 0x4a1   : > { %v1847_v26 = vpop.eup %1846 }
 0x4a2   : > { %v911_v27 = vsel %vm635_vm2, %v1847_v26, 0.0  ;;  %v1020_v39 = vpop.permute.xlu1 %1019 }
 0x4a3   : > { %912 = vadd.xlane.f32.xlu0 %v911_v27 }
 0x4b9   : > { %971 = vrot.lane.b32.xlu0 %v2113_v12, %s1944_s28 }
 0x530   : > { %v913_v28 = vpop.xlane.xlu0 %912 }
 0x531   : > { %1848 = vrcp.f32 %v913_v28 }
 0x534   : > { %v972_v29 = vpop.permute.xlu0 %971 }
 0x535   : > { %v977_v30 = vsel %vm635_vm2, %v972_v29, 0 }
 0x536   : > { %1724 = vmatpush3.bf16.xpose.msra.mxu0 %v977_v30 }
 0x537   : > { %1735 = vmatprep.subr.bf16.mxu0 %v1940_v4 }
 0x53b   : > { %v1849_v32 = vpop.eup %1848 }
 0x53c   : > { %v915_v35 = vmul.f32 %v1849_v32, %v1847_v26 }
 0x53d   : > { %1726 = vmatmul.mubr.msk.bf16.vlgmr.msra.gmra.mrb[16].mxu0 %vm635_vm2, %v970_v34 }
 0x53e   : > { %v917_v38 = vpack.c.bf16 %v915_v35, %v915_v35  ;;  %1737 = vmatprep.mubr.msk.bf16.mxu0 %vm1941_vm0, %v1940_v4  ;;  %v916_v7 = vadd.f32 %v915_v35, %v2172_v57 }
 0x540   : > { %1720 = vmatmul.mubr.msk.bf16.vlgmr.msra.gmra.mrb[12].mxu1 %vm635_vm2, %v917_v38 }
 0x541   : > { %1730 = vmatpush3.bf16.xpose.msra.mxu1 %v1027_v36  ;;  %1731 = vmatprep.mubr.msk.bf16.mxu1 %vm1941_vm0, %v1940_v4 }
 0x542   : > { %1741 = vmatprep.subr.bf16.mxu1 %v1940_v4 }
 0x548   : > { %1732 = vmatmul.mubr.msk.bf16.vlgmr.msra.gmra.mrb[16].mxu1 %vm635_vm2, %v1020_v39 }
 0x549   : > { %1743 = vmatprep.mubr.msk.bf16.mxu1 %vm1941_vm0, %v1940_v4 }
 0x610   : > { %v1013_v40 = vpop.f32.mrb[16].mxu0 }
 0x611   : > { %v1727_v41 = vpop.f32.mrb[17].mxu0 }
 0x612   : > { %v1016_v42 = vpop.f32.mrb[18].mxu0 }
 0x613   : > { %v2218_v43 = vpop.f32.mrb[12].mxu1  ;;  %v1728_v44 = vpop.f32.mrb[19].mxu0 }
 0x614   : > { %v1721_v45 = vpop.f32.mrb[13].mxu1  ;;  %v1841_v44 = vld [vmem:[%s2347_s5 + $0x8] sm:$0xff]  }
 0x615   : > { %v966_v46 = vpop.f32.mrb[14].mxu1 }
 0x616   : > { %v1722_v47 = vpop.f32.mrb[15].mxu1 }
 0x61b   : > { %v1063_v48 = vpop.f32.mrb[16].mxu1 }
 0x61c   : > { %v1069_v49 = vsel %vm2153_vm4, %v1013_v40, %v1063_v48  ;;  %v1733_v50 = vpop.f32.mrb[17].mxu1 }
 0x61d   : > { %v1070_v51 = vmul.f32 0.35355338, %v1069_v49  ;;  %v1066_v52 = vpop.f32.mrb[18].mxu1 }
 0x61e   : > { %v1734_v53 = vpop.f32.mrb[19].mxu1 }
 0x61f   : > { %v1071_v54 = vadd.f32 %v1070_v51, %v2157_v37 }
 0x621   : > { %v1072_v55 = vsel %vm635_vm2, %v1071_v54, -inf }
 0x622   : > { %1073 = vmax.xlane.f32.xlu1 %v1072_v55 }
 0x633   : > { %1085 = vrot.lane.b32.xlu1 %v2190_v18, %s1944_s28  ;;  %s1635_s28 = sshll.u32 %s1930_s16, 7 }
 0x634   : > { %s2287_s22 = scalar_lea.hbm %s2352_s10, %s1635_s28 }
 0x637   : > { %1185 = vrot.lane.b32.xlu1 %v2120_v14, %s1945_s29 }
 0x63b   : > { %1133 = vrot.lane.b32.xlu1 %v2131_v19, %s1945_s29 }
 0x6af   : > { %v1074_v56 = vpop.xlane.xlu1 %1073 }
 0x6b0   : > { %v1075_v58 = vsub.f32 %v1071_v54, %v1074_v56 }
 0x6b2   : > { %v1076_v59 = vmul.f32 1.442695, %v1075_v58 }
 0x6b3   : > { %v1086_v60 = vpop.permute.xlu1 %1085 }
 0x6b4   : > { %1850 = vpow2.f32 %v1076_v59  ;;  %v1091_v61 = vsel %vm750_vm5, %v1086_v60, 0 }
 0x6b5   : > { %1736 = vmatpush3.bf16.msra.mxu0 %v1091_v61 }
 0x6b6   : > { %1747 = vmatprep.subr.bf16.mxu0 %v1940_v4 }
 0x6b7   : > { %v1186_v1 = vpop.permute.xlu1 %1185 }
 0x6bb   : > { %v1134_v5 = vpop.permute.xlu1 %1133 }
 0x6be   : > { %v1851_v62 = vpop.eup %1850 }
 0x6bf   : > { %v1078_v63 = vsel %vm635_vm2, %v1851_v62, 0.0 }
 0x6c0   : > { %1079 = vadd.xlane.f32.xlu0 %v1078_v63 }
 0x6d6   : > { %1135 = vrot.lane.b32.xlu0 %v2113_v12, %s1945_s29  ;;  %v1191_v12 = vsel %vm635_vm2, %v1186_v1, 0 }
 0x6da   : > { %1183 = vrot.lane.b32.xlu0 %v2133_v20, %s1945_s29 }
 0x74d   : > { %v1080_v14 = vpop.xlane.xlu0 %1079 }
 0x74e   : > { %1852 = vrcp.f32 %v1080_v14 }
 0x751   : > { %v1136_v19 = vpop.permute.xlu0 %1135 }
 0x752   : > { %v1141_v0 = vsel %vm635_vm2, %v1136_v19, 0 }
 0x753   : > { %1742 = vmatpush3.bf16.xpose.msra.mxu1 %v1141_v0 }
 0x754   : > { %1753 = vmatprep.subr.bf16.mxu1 %v1940_v4 }
 0x755   : > { %v1184_v10 = vpop.permute.xlu0 %1183 }
 0x758   : > { %v1853_v3 = vpop.eup %1852 }
 0x759   : > { %v1082_v6 = vmul.f32 %v1853_v3, %v1851_v62 }
 0x75a   : > { %1744 = vmatmul.mubr.msk.bf16.vlgmr.msra.gmra.mrb[20].mxu1 %vm635_vm2, %v1134_v5 }
 0x75b   : > { %v1084_v9 = vpack.c.bf16 %v1082_v6, %v1082_v6  ;;  %1755 = vmatprep.mubr.msk.bf16.mxu1 %vm1941_vm0, %v1940_v4  ;;  %v1083_v20 = vadd.f32 %v1082_v6, %v916_v7 }
 0x75d   : > { %1738 = vmatmul.mubr.msk.bf16.vlgmr.msra.gmra.mrb[20].mxu0 %vm635_vm2, %v1084_v9 }
 0x75e   : > { %1748 = vmatpush3.bf16.xpose.msra.mxu0 %v1191_v12  ;;  %1749 = vmatprep.mubr.msk.bf16.mxu0 %vm1941_vm0, %v1940_v4 }
 0x75f   : > { %1759 = vmatprep.subr.bf16.mxu0 %v1940_v4 }
 0x765   : > { %1750 = vmatmul.mubr.msk.bf16.vlgmr.msra.gmra.mrb[24].mxu0 %vm635_vm2, %v1184_v10 }
 0x766   : > { %1763 = vmatprep.mubr.msk.bf16.mxu0 %vm1941_vm0, %v1940_v4 }
 0x82d   : > { %v1177_v57 = vpop.f32.mrb[20].mxu1 }
 0x82e   : > { %v1745_v11 = vpop.f32.mrb[21].mxu1 }
 0x82f   : > { %v1180_v13 = vpop.f32.mrb[22].mxu1 }
 0x830   : > { %v1127_v15 = vpop.f32.mrb[20].mxu0  ;;  %v1746_v16 = vpop.f32.mrb[23].mxu1 }
 0x831   : > { %v1739_v17 = vpop.f32.mrb[21].mxu0 }
 0x832   : > { %v1130_v21 = vpop.f32.mrb[22].mxu0 }
 0x833   : > { %v1740_v22 = vpop.f32.mrb[23].mxu0 }
 0x838   : > { %v1227_v23 = vpop.f32.mrb[24].mxu0 }
 0x839   : > { %v1233_v24 = vsel %vm2153_vm4, %v1177_v57, %v1227_v23  ;;  %v1751_v25 = vpop.f32.mrb[25].mxu0 }
 0x83a   : > { %v1234_v26 = vmul.f32 0.35355338, %v1233_v24  ;;  %v1230_v27 = vpop.f32.mrb[26].mxu0 }
 0x83b   : > { %v1752_v28 = vpop.f32.mrb[27].mxu0 }
 0x83c   : > { %v1235_v29 = vadd.f32 %v1234_v26, %v2157_v37 }
 0x83e   : > { %v1236_v30 = vsel %vm635_vm2, %v1235_v29, -inf }
 0x83f   : > { %1237 = vmax.xlane.f32.xlu1 %v1236_v30 }
 0x850   : > { %1298 = vrot.lane.b32.xlu1 %v2218_v43, %s1946_s30 }
 0x854   : > { %1302 = vrot.lane.b32.xlu1 %v1127_v15, %s1947_s11  ;;  %s1948_s11 = smov 24  }
 0x8cc   : > { %v1238_v31 = vpop.xlane.xlu1 %1237 }
 0x8cd   : > { %v1239_v32 = vsub.f32 %v1235_v29, %v1238_v31 }
 0x8cf   : > { %v1240_v34 = vmul.f32 1.442695, %v1239_v32 }
 0x8d0   : > { %v1299_v49 = vpop.permute.xlu1 %1298 }
 0x8d1   : > { %1854 = vpow2.f32 %v1240_v34  ;;  %v1309_v51 = vsel %vm635_vm2, %v2184_v2, %v1299_v49 }
 0x8d4   : > { %v1303_v50 = vpop.permute.xlu1 %1302 }
 0x8d5   : > { %v1311_v52 = vsel %vm1310_vm6, %v1309_v51, %v1303_v50 }
 0x8db   : > { %v1855_v33 = vpop.eup %1854 }
 0x8dc   : > { %v1242_v35 = vsel %vm635_vm2, %v1855_v33, 0.0 }
 0x8dd   : > { %1243 = vadd.xlane.f32.xlu0 %v1242_v35 }
 0x8f3   : > { %1249 = vrot.lane.b32.xlu0 %v2190_v18, %s1945_s29  ;;  %v1840_v18 = vld [vmem:[%s2347_s5] sm:$0xff]   ;;  %s1440_s29 = sshll.u32 %s2262_s24, 4  ;;  %s1441_s29 = int_to_ptr.vmem [resolvable:$true] %s1440_s29 }
 0x8f4   : > { %1760 = vmatpush3.bf16.msra.mxu0 %v1840_v18  ;;  %s1860_s20 = scalar_lea.vmem %s1441_s29, 128  ;;  %p1867_p4 = scmp.lt.s32.totalorder %s1441_s29, %s1865_s1 }
 0x8f5   : > { %1761 = vmatprep.subr.bf16.mxu0 %v1940_v4  ;;  %v1628_v4 = vld [vmem:[%s2348_s6] ss:$0 sm:$0xff]  ;;  %p1861_p1 = scmp.ne.s32.totalorder %s1441_s29, %s1860_s20  ;;  %p1868_p6 = scmp.lt.s32.totalorder %s1866_s2, %s1860_s20 }
 0x8f7   : > { %p1862_p2 = pnand %p1861_p1, %p2044_p5  ;;  %p1869_p7 = por %p1868_p6, %p1867_p4 }
 0x8f8   : > { %1762 = vmatpush3.bf16.msra.mxu0 %v1841_v44 }
 0x8f9   : > { %p1863_p3 = pneg %p1862_p2 }
 0x8fb   : > { %p1870_p8 = pnand %p1869_p7, %p1863_p3 }
 0x96a   : > { %v1244_v37 = vpop.xlane.xlu0 %1243 }
 0x96b   : > { %1856 = vrcp.f32 %v1244_v37 }
 0x96e   : > { %v1250_v36 = vpop.permute.xlu0 %1249 }
 0x96f   : > { %v1255_v38 = vsel %vm750_vm5, %v1250_v36, 0 }
 0x970   : > { %1754 = vmatpush3.bf16.msra.mxu1 %v1255_v38 }
 0x975   : > { %v1857_v39 = vpop.eup %1856 }
 0x976   : > { %v1246_v40 = vmul.f32 %v1857_v39, %v1855_v33 }
 0x978   : > { %v1248_v41 = vpack.c.bf16 %v1246_v40, %v1246_v40  ;;  %v1247_v42 = vadd.f32 %v1246_v40, %v1083_v20 }
 0x97a   : > { %1756 = vmatmul.mubr.msk.bf16.vlgmr.msra.gmra.mrb[24].mxu1 %vm635_vm2, %v1248_v41  ;;  %v1413_v43 = vmul.f32 0.25, %v1247_v42 }
 0x97c   : > { %1414 = vst.msk [vmem:[%s2262_s24] sm:$0xff] %vm635_vm2, %v1413_v43 }
 0xa4d   : > { %v1291_v45 = vpop.f32.mrb[24].mxu1 }
 0xa4e   : > { %1306 = vrot.lane.b32.xlu0 %v1291_v45, %s1948_s11  ;;  %v1757_v46 = vpop.f32.mrb[25].mxu1 }
 0xa4f   : > { %v1294_v47 = vpop.f32.mrb[26].mxu1 }
 0xa50   : > { %v1758_v48 = vpop.f32.mrb[27].mxu1 }
 0xac0   : > { %v1307_v53 = vpop.permute.xlu0 %1306 }
 0xac1   : > { %v1313_v54 = vsel %vm1312_vm7, %v1311_v52, %v1307_v53 }
 0xac2   : > { %v1314_v55 = vpack.c.bf16 %v1313_v54, %v1313_v54 }
 0xac4   : > { %1764 = vmatmul.mubr.msk.bf16.vlgmr.msra.gmra.mrb[28].mxu0 %vm523_vm1, %v1314_v55 }
 0xb97   : > { %v1375_v56 = vpop.f32.mrb[28].mxu0 }
 0xb98   : > { %v1376_v58 = vadd.f32 %v1628_v4, %v1375_v56  ;;  %v1765_v59 = vpop.f32.mrb[29].mxu0 }
 0xb99   : > { %v1378_v60 = vpop.f32.mrb[30].mxu0 }
 0xb9a   : > { %v1766_v61 = vpop.f32.mrb[31].mxu0  ;;  %v1381_v2 = vadd.f32 %v1376_v58, %v2104_v8 }
 0xb9c   : > { %v1382_v62 = vsel %vm523_vm1, %v1381_v2, 0.0 }
 0xb9d   : > { %1383 = vadd.xlane.f32.xlu1 %v1382_v62 }
 0xc2a   : > { %v1384_v63 = vpop.xlane.xlu1 %1383 }
 0xc2b   : > { %v1386_v14 = vmul.f32 0.03125, %v1384_v63 }
 0xc2d   : > { %v1387_v19 = vsub.f32 %v1381_v2, %v1386_v14 }
 0xc2f   : > { %v1388_v0 = vmul.f32 %v1387_v19, %v1387_v19 }
 0xc31   : > { %v1389_v1 = vsel %vm523_vm1, %v1388_v0, 0.0 }
 0xc32   : > { %1390 = vadd.xlane.f32.xlu0 %v1389_v1 }
 0xc33   : > { %1873 = shalt.err (!%p1870_p8)
}
 0xc34   : > { %s1874_s16 = scalar_lea.hbm %s2287_s22, 128  ;;  %s1878_s0 = scalar_lea.hbm %s2352_s10, 256 }
 0xc35   : > { %p1875_p11 = scmp.ne.s32.totalorder %s2287_s22, %s1874_s16  ;;  %p1879_p0 = scmp.lt.u32.totalorder %s2287_s22, %s2352_s10 }
 0xc36   : > { %p1880_p1 = scmp.lt.u32.totalorder %s1878_s0, %s1874_s16  ;;  %p1882_p3 = scmp.lt.u32.totalorder %s1874_s16, %s2287_s22 }
 0xc37   : > { %p1876_p12 = pnand %p1875_p11, %p2044_p5 }
 0xc38   : > { %p1881_p2 = por %p1880_p1, %p1879_p0 }
 0xc39   : > { %p1877_p13 = pneg %p1876_p12 }
 0xc3a   : > { %p1883_p4 = por %p1882_p3, %p1881_p2 }
 0xc3c   : > { %p1884_p6 = pnand %p1883_p4, %p1877_p13 }
 0xc3e   : > { %1887 = shalt.err (!%p1884_p6)
}
 0xc3f   : > { %1769 = dma.vmem_to_hbm [thread:$0]  (%p2044_p5), %s1441_s29, 128, %s2287_s22, %s1423_s27   ;;  %v1632_v7 = vld [vmem:[%s2349_s7] ss:$0 sm:$0xff] }
 0xc40   : > { %v1633_v9 = vld [vmem:[%s2350_s8] ss:$0 sm:$0xff]  ;;  %s2364_s16 = sshll.u32 %s2091_s12, 3 }
 0xc41   : > { %s501_s29 = scalar_lea.vmem %s2351_s9, %s2364_s16 }
 0xcbf   : > { %v1391_v8 = vpop.xlane.xlu0 %1390 }
 0xcc0   : > { %v1392_v3 = vmul.f32 0.03125, %v1391_v8 }
 0xcc2   : > { %v1393_v5 = vadd.f32 1e-05, %v1392_v3 }
 0xcc4   : > { %1858 = vrsqrt.f32 %v1393_v5 }
 0xcce   : > { %v1859_v6 = vpop.eup %1858 }
 0xccf   : > { %v1395_v12 = vmul.f32 %v1859_v6, %v1387_v19 }
 0xcd1   : > { %v1403_v20 = vmul.f32 %v1632_v7, %v1395_v12 }
 0xcd3   : > { %v1411_v10 = vadd.f32 %v1633_v9, %v1403_v20 }
 0xcd5   : > { %1412 = vst.msk [vmem:[%s501_s29] sm:$0xff] %vm523_vm1, %v1411_v10 }
 0xcd6 PF: > { %s1462_s22 = sand.u32 1, %s1918_s13   ;;  %p1772_p5 = pnand %p1595_p10, %p2055_p9 }
 0xcd7   : > { %s1463_s27 = scalar_lea.sflag [#allocation4], %s1462_s22 }
 0xcd8   : > { %1913 = dma.done.wait (!%p1772_p5), %s1463_s27, 128  }
 0xcd9   : > { %1915 = vsyncadd (!%p1772_p5), %s1463_s27, 4294967168  ;;  %s24_s18 = sadd.s32 1, %s1938_s18   ;;  %s2365_s13 = smov %s1922_s14 }
 0xcda   : > { %p21_p7 = scmp.ge.s32.totalorder %s24_s18, 4   ;;  %s2366_s14 = smov %s1926_s15 }
 0xcdb   : > { %s2367_s15 = smov %s2053_s25  ;;  %s2368_s16 = smov %s1934_s17 }
 0xcdc   : > { %s2369_s17 = smov %s2371_s21  ;;  %23 = sbr.rel (!%p21_p7) target bundleno = 8 (0x8), region = 161 }
 0xce3   :  { %1468 = vsyncpa [#allocation4], 1 }
 0xce4   :  { %1470 = vsyncpa [#allocation4 + $0x1], 1 }

// kernel: decoder_layer_forward.9
= control target key start
LH: loop header
LB: loop body
LE: loop exit
PB: predicated region body
PF: predicated region fallthrough
CT: control target
= control target key end

     0   :  { %v290_v0 = vmov 0.0   ;;  %vm291_vm0 = vmmov 0   ;;  %vm53_vm1 = vcmask 261120   ;;  %vm140_vm2 = vcmask 523264   ;;  %s381_s1 = inlined_call_operand.vmem [shape: bf16[32,64], index: 1, kind: input, shape index: {}]   ;;  %s382_s0 = inlined_call_operand.vmem [shape: f32[16,32], index: 0, kind: input, shape index: {}]   ;;  %s383_s3 = inlined_call_operand.vmem [shape: bf16[64,32], index: 3, kind: input, shape index: {}]   ;;  %s384_s2 = inlined_call_operand.vmem [shape: f32[1,64], index: 2, kind: input, shape index: {}]   ;;  %s385_s4 = inlined_call_operand.vmem [shape: f32[1,32], index: 4, kind: input, shape index: {}]   ;;  %s386_s5 = inlined_call_operand.vmem [shape: f32[1,32], index: 5, kind: input, shape index: {}]   ;;  %s387_s6 = inlined_call_operand.vmem [shape: f32[1,32], index: 6, kind: input, shape index: {}]   ;;  %s388_s7 = inlined_call_operand.vmem [shape: f32[16,32], index: 7, kind: output, shape index: {}]  }
   0x1   :  { %258 = vmatprep.subr.bf16.mxu0 %v290_v0  ;;  %v280_v1 = vld [vmem:[%s381_s1] sm:$0xff]   ;;  %262 = vmatprep.mubr.msk.bf16.mxu0 %vm291_vm0, %v290_v0  ;;  %v281_v2 = vld [vmem:[%s381_s1 + $0x8] sm:$0xff]   ;;  %v284_v8 = vld [vmem:[%s383_s3 + $0x10] sm:$0xff]  }
   0x2   :  { %266 = vmatprep.subr.bf16.mxu1 %v290_v0  ;;  %274 = vmatprep.mubr.msk.bf16.mxu1 %vm291_vm0, %v290_v0  ;;  %v27_v3 = vld [vmem:[%s382_s0] sm:$0xff]  ;;  %v28_v4 = vld [vmem:[%s382_s0 + $0x8] sm:$0xff]  ;;  %v285_v9 = vld [vmem:[%s383_s3 + $0x18] sm:$0xff]  }
   0x3   :  { %259 = vmatpush3.bf16.msra.mxu0 %v280_v1  ;;  %v282_v5 = vld [vmem:[%s383_s3] sm:$0xff]   ;;  %v283_v6 = vld [vmem:[%s383_s3 + $0x8] sm:$0xff]   ;;  %v29_v7 = vpack.c.bf16 %v28_v4, %v27_v3 }
   0x4   :  { %260 = vmatprep.subr.bf16.mxu0 %v290_v0  ;;  %267 = vmatpush3.bf16.msra.mxu1 %v282_v5  ;;  %v238_v10 = vld [vmem:[%s384_s2] ss:$0 sm:$0xff] }
   0x5   :  { %268 = vmatprep.subr.bf16.mxu1 %v290_v0  ;;  %v242_v20 = vld [vmem:[%s385_s4] ss:$0 sm:$0xff] }
   0x6   :  { %v248_v48 = vld [vmem:[%s386_s5] ss:$0 sm:$0xff] }
   0x7   :  { %261 = vmatpush3.bf16.msra.mxu0 %v281_v2  ;;  %v249_v50 = vld [vmem:[%s387_s6] ss:$0 sm:$0xff] }
   0x8   :  { %269 = vmatpush3.bf16.msra.mxu1 %v283_v6 }
   0x9   :  { %270 = vmatprep.subr.bf16.mxu1 %v290_v0 }
   0xa   :  { %263 = vmatmul.mubr.msk.bf16.vlgmr.msra.gmra.mrb[0].mxu0 %vm53_vm1, %v29_v7 }
   0xc   :  { %271 = vmatpush3.bf16.msra.mxu1 %v284_v8 }
   0xd   :  { %272 = vmatprep.subr.bf16.mxu1 %v290_v0 }
  0x10   :  { %273 = vmatpush3.bf16.msra.mxu1 %v285_v9 }
  0xdd   :  { %v91_v11 = vpop.f32.mrb[0].mxu0 }
  0xde   :  { %v92_v12 = vadd.f32 %v238_v10, %v91_v11  ;;  %v264_v13 = vpop.f32.mrb[1].mxu0 }
  0xdf   :  { %v94_v14 = vpop.f32.mrb[2].mxu0 }
  0xe0   :  { %v95_v15 = vadd.f32 %v238_v10, %v94_v14  ;;  %v265_v16 = vpop.f32.mrb[3].mxu0  ;;  %v98_v17 = vmax.f32 %v92_v12, 0.0 }
  0xe2   :  { %v99_v18 = vmax.f32 %v95_v15, 0.0 }
  0xe4   :  { %v100_v19 = vpack.c.bf16 %v99_v18, %v98_v17 }
  0xe6   :  { %275 = vmatmul.mubr.msk.bf16.vlgmr.msra.gmra.mrb[0].mxu1 %vm140_vm2, %v100_v19 }
 0x1b9   :  { %v178_v21 = vpop.f32.mrb[0].mxu1 }
 0x1ba   :  { %v179_v22 = vadd.f32 %v242_v20, %v178_v21  ;;  %v276_v23 = vpop.f32.mrb[1].mxu1 }
 0x1bb   :  { %v181_v24 = vpop.f32.mrb[2].mxu1 }
 0x1bc   :  { %v182_v25 = vadd.f32 %v242_v20, %v181_v24  ;;  %v277_v26 = vpop.f32.mrb[3].mxu1  ;;  %v185_v27 = vadd.f32 %v179_v22, %v27_v3 }
 0x1be   :  { %v187_v28 = vsel %vm53_vm1, %v185_v27, 0.0  ;;  %v186_v29 = vadd.f32 %v182_v25, %v28_v4 }
 0x1bf   :  { %188 = vadd.xlane.f32.xlu0 %v187_v28 }
 0x1c0   :  { %v190_v30 = vsel %vm53_vm1, %v186_v29, 0.0 }
 0x1c3   :  { %191 = vadd.xlane.f32.xlu0 %v190_v30 }
 0x24c   :  { %v189_v31 = vpop.xlane.xlu0 %188 }
 0x24d   :  { %v194_v32 = vmul.f32 0.03125, %v189_v31 }
 0x24f   :  { %v196_v33 = vsub.f32 %v185_v27, %v194_v32 }
 0x250   :  { %v192_v34 = vpop.xlane.xlu0 %191 }
 0x251   :  { %v195_v35 = vmul.f32 0.03125, %v192_v34  ;;  %v198_v36 = vmul.f32 %v196_v33, %v196_v33 }
 0x253   :  { %v197_v37 = vsub.f32 %v186_v29, %v195_v35  ;;  %v200_v38 = vsel %vm53_vm1, %v198_v36, 0.0 }
 0x254   :  { %201 = vadd.xlane.f32.xlu1 %v200_v38 }
 0x255   :  { %v199_v39 = vmul.f32 %v197_v37, %v197_v37 }
 0x257   :  { %v203_v40 = vsel %vm53_vm1, %v199_v39, 0.0 }
 0x258   :  { %204 = vadd.xlane.f32.xlu1 %v203_v40 }
 0x2e1   :  { %v202_v41 = vpop.xlane.xlu1 %201 }
 0x2e2   :  { %v206_v42 = vmul.f32 0.03125, %v202_v41 }
 0x2e4   :  { %v208_v43 = vadd.f32 1e-05, %v206_v42 }
 0x2e5   :  { %v205_v44 = vpop.xlane.xlu1 %204 }
 0x2e6   :  { %286 = vrsqrt.f32 %v208_v43  ;;  %v207_v45 = vmul.f32 0.03125, %v205_v44 }
 0x2e8   :  { %v209_v46 = vadd.f32 1e-05, %v207_v45 }
 0x2ea   :  { %288 = vrsqrt.f32 %v209_v46 }
 0x2f0   :  { %v287_v47 = vpop.eup %286 }
 0x2f1   :  { %v212_v49 = vmul.f32 %v287_v47, %v196_v33 }
 0x2f3   :  { %v221_v51 = vmul.f32 %v248_v48, %v212_v49 }
 0x2f4   :  { %v289_v52 = vpop.eup %288 }
 0x2f5   :  { %v230_v53 = vadd.f32 %v249_v50, %v221_v51  ;;  %v213_v54 = vmul.f32 %v289_v52, %v197_v37 }
 0x2f7   :  { %232 = vst.msk [vmem:[%s388_s7] sm:$0xff] %vm53_vm1, %v230_v53  ;;  %v222_v55 = vmul.f32 %v248_v48, %v213_v54 }
 0x2f9   :  { %v231_v56 = vadd.f32 %v249_v50, %v222_v55 }
 0x2fb   :  { %233 = vst.msk [vmem:[%s388_s7 + $0x8] sm:$0xff] %vm53_vm1, %v231_v56 }

</bundles_post_ra>
